<compile_context>
chip_gen: v7x
topology: tpu7x:2x2x1
jax: 0.10.0
libtpu: 0.0.40
codegen_flags: <defaults>
</compile_context>

<pallas_src>
import functools

import jax
import jax.numpy as jnp
from jax import lax
from jax.experimental import pallas as pl
from jax.experimental.pallas import tpu as pltpu

LANES = 128
CHUNK = 256                    # rows per inner compute chunk (multiple of 32 for int8 targets)
TM_MAX = 4096                  # rows per grid step -> 2 MiB f32 per input tile
NC = 2                         # leading "parallel" axis: one slab half per v7x TensorCore
PAD_LOGIT = -100.0             # masked logit: sigmoid(-100) == 0, log(1+exp(-100)) == 0 in f32
MIN_PALLAS_ELEMENTS = 2 * CHUNK * LANES   # below this, plain XLA wins
VMEM_LIMIT_BYTES = 32 * 1024 * 1024       # fits 2x double-buffered 2 MiB tiles everywhere


def _cdiv(a, b):
    return -(-a // b)


def _round_up(x, m):
    return ((x + m - 1) // m) * m


def _combo_partial_kernel(p_ref, t_ref, o_ref, *, tm, n_valid, nblocks, steps,
                          needs_mask, has_extra_blocks):
    """Accumulates per-core partial sums into a lane-dense (1, 32, 128) block.

    Sublane rows 0:8   -> sum of per-element BCE-with-logits terms
    Sublane rows 8:16  -> sum of sigmoid(pred) * target
    Sublane rows 16:24 -> sum of sigmoid(pred)
    Sublane rows 24:32 -> sum of target
    """
    c = pl.program_id(0)
    j = pl.program_id(1)
    blk = c * steps + j          # flat row-block index handled by this grid step

    @pl.when(j == 0)
    def _init():
        o_ref[...] = jnp.zeros_like(o_ref)

    def accumulate():
        n_chunks = tm // CHUNK

        def body(i, carry):
            s_bce, s_int, s_sig, s_tgt = carry
            off = pl.multiple_of(i * CHUNK, CHUNK)
            x = p_ref[pl.ds(off, CHUNK), :].astype(jnp.float32)
            y = t_ref[pl.ds(off, CHUNK), :].astype(jnp.float32)

            if needs_mask:
                # Element mask for the ragged tail (and any lane padding).
                row = (blk * tm + off
                       + lax.broadcasted_iota(jnp.int32, (CHUNK, LANES), 0))
                lane = lax.broadcasted_iota(jnp.int32, (CHUNK, LANES), 1)
                valid = row * LANES + lane < n_valid
                x = jnp.where(valid, x, PAD_LOGIT)   # contributes exactly 0 everywhere
                y = jnp.where(valid, y, 0.0)

            # Shared transcendental: e = exp(-|x|) drives both BCE and sigmoid.
            e = jnp.exp(-jnp.abs(x))
            one_plus_e = 1.0 + e
            bce = jnp.maximum(x, 0.0) - x * y + jnp.log(one_plus_e)
            inv = pl.reciprocal(one_plus_e, approx=True)   # EUP slot; Dice terms only
            sig = jnp.where(x >= 0.0, inv, e * inv)

            def fold(a):   # (CHUNK,128) -> (8,128) via vreg-aligned sublane adds
                return jnp.sum(a.reshape(CHUNK // 8, 8, LANES), axis=0)

            return (s_bce + fold(bce), s_int + fold(sig * y),
                    s_sig + fold(sig), s_tgt + fold(y))

        zeros = jnp.zeros((8, LANES), jnp.float32)
        s_bce, s_int, s_sig, s_tgt = lax.fori_loop(
            0, n_chunks, body, (zeros, zeros, zeros, zeros))

        o_ref[0, 0:8, :] += s_bce
        o_ref[0, 8:16, :] += s_int
        o_ref[0, 16:24, :] += s_sig
        o_ref[0, 24:32, :] += s_tgt

    if has_extra_blocks:
        # Grid covers nc*steps >= nblocks row-blocks; skip the duplicates.
        pl.when(blk < nblocks)(accumulate)
    else:
        accumulate()


def _combo_loss_ref(pred, target, alpha=0.5, smooth=1.0):
    """Pure-JAX reference / tiny-input fallback."""
    x = pred.astype(jnp.float32)
    y = target.astype(jnp.float32)
    bce = jnp.mean(jnp.maximum(x, 0.0) - x * y + jnp.log1p(jnp.exp(-jnp.abs(x))))
    p = jax.nn.sigmoid(x).reshape(-1)
    t = y.reshape(-1)
    inter = jnp.sum(p * t)
    union = jnp.sum(p) + jnp.sum(t)
    dice = (2.0 * inter + smooth) / (union + smooth)
    return alpha * bce + (1.0 - alpha) * (1.0 - dice)


def combo_loss(pred, target, alpha=0.5, smooth=1.0, *,
               tm_max=TM_MAX, min_pallas_elements=MIN_PALLAS_ELEMENTS):
    assert pred.shape == target.shape
    n_total = 1
    for d in pred.shape:
        n_total *= d

    # Tiny inputs: fused XLA reduction beats the grid overhead / NC split.
    if n_total < max(min_pallas_elements, 2 * CHUNK * LANES):
        return _combo_loss_ref(pred, target, alpha, smooth)

    # Keep the target in its native dtype (cast to f32 happens in-kernel, free
    # on the VPU).  Only bool is converted (1-byte int8 mask) to avoid i1 refs.
    if target.dtype == jnp.bool_:
        target = target.astype(jnp.int8)

    p_flat = pred.reshape(-1)
    t_flat = target.reshape(-1)
    n_lane = _round_up(n_total, LANES)
    if n_lane != n_total:
        # TODO(synk): rare non-multiple-of-128 case still costs one HBM copy;
        # values don't matter (the in-kernel mask zeroes their contribution).
        p_flat = jnp.pad(p_flat, (0, n_lane - n_total))
        t_flat = jnp.pad(t_flat, (0, n_lane - n_total))
    rows = n_lane // LANES                      # >= 512 given the size threshold
    p2d = p_flat.reshape(rows, LANES)           # zero-copy reshape
    t2d = t_flat.reshape(rows, LANES)

    tm_cap = max(CHUNK, (tm_max // CHUNK) * CHUNK)
    tm = min(tm_cap, _round_up(_cdiv(rows, NC), CHUNK))     # guaranteed tm <= rows
    nblocks = _cdiv(rows, tm)
    nc = min(NC, nblocks)
    steps = _cdiv(nblocks, nc)
    has_extra_blocks = nc * steps > nblocks
    needs_mask = (nblocks * tm * LANES) > n_total

    def row_map(c, j, s=steps, nb=nblocks):
        return (jnp.minimum(c * s + j, nb - 1), 0)          # clamp duplicate blocks

    kernel = functools.partial(
        _combo_partial_kernel, tm=tm, n_valid=n_total, nblocks=nblocks,
        steps=steps, needs_mask=needs_mask, has_extra_blocks=has_extra_blocks)

    partials = pl.pallas_call(
        kernel,
        out_shape=jax.ShapeDtypeStruct((nc, 4 * 8, LANES), jnp.float32),
        grid_spec=pltpu.PrefetchScalarGridSpec(
            num_scalar_prefetch=0,
            grid=(nc, steps),
            in_specs=[
                pl.BlockSpec((tm, LANES), row_map),
                pl.BlockSpec((tm, LANES), row_map),
            ],
            out_specs=pl.BlockSpec((1, 4 * 8, LANES), lambda c, j: (c, 0, 0)),
        ),
        compiler_params=pltpu.CompilerParams(
            dimension_semantics=("parallel", "arbitrary"),
            vmem_limit_bytes=VMEM_LIMIT_BYTES),
    )(p2d, t2d)

    # Tiny epilogue: combine per-core lane-shaped partials into the 4 scalars.
    sums = jnp.sum(partials.reshape(nc, 4, 8, LANES), axis=(0, 2, 3))
    bce_mean = sums[0] / jnp.float32(n_total)
    dice = (2.0 * sums[1] + smooth) / (sums[2] + sums[3] + smooth)
    return alpha * bce_mean + (1.0 - alpha) * (1.0 - dice)


if __name__ == "__main__":
    key = jax.random.PRNGKey(0)
    k1, k2, k3, k4 = jax.random.split(key, 4)

    # Case 1: NCHW logits + binary float targets; exercises the Pallas kernel
    # with a ragged last row-block (76800 elements -> rows=600, tm=512).
    shape1 = (2, 4, 96, 100)
    pred1 = jax.random.normal(k1, shape1, dtype=jnp.float32)
    target1 = (jax.random.uniform(k2, shape1) > 0.5).astype(jnp.float32)
    loss1 = jax.block_until_ready(combo_loss(pred1, target1, alpha=0.5, smooth=1.0))
    ref1 = jax.block_until_ready(_combo_loss_ref(pred1, target1, 0.5, 1.0))
    assert abs(float(loss1) - float(ref1)) < 2e-3, (float(loss1), float(ref1))

    # Case 2: small tm_max forces an odd block count -> exercises the
    # duplicate-block skip path and different alpha/smooth.
    loss2 = jax.block_until_ready(combo_loss(pred1, target1, 0.25, 2.0, tm_max=256))
    ref2 = jax.block_until_ready(_combo_loss_ref(pred1, target1, 0.25, 2.0))
    assert abs(float(loss2) - float(ref2)) < 2e-3, (float(loss2), float(ref2))

    # Case 3: tiny (2,4,16,16) input -> pure-JAX fallback path.
    shape3 = (2, 4, 16, 16)
    pred3 = jax.random.normal(k3, shape3, dtype=jnp.float32)
    target3 = (jax.random.uniform(k4, shape3) > 0.5).astype(jnp.float32)
    loss3 = jax.block_until_ready(combo_loss(pred3, target3))
    ref3 = jax.block_until_ready(_combo_loss_ref(pred3, target3))
    assert abs(float(loss3) - float(ref3)) < 1e-5, (float(loss3), float(ref3))

    print("KERNEL_OK")
</pallas_src>

<mosaic_0001>
module attributes {stable_mosaic.version = 11 : i64} {
  func.func @_combo_partial_kernel(%arg0: i32, %arg1: i32, %arg2: memref<512x128xf32, #tpu.memory_space<vmem>>, %arg3: memref<512x128xf32, #tpu.memory_space<vmem>>, %arg4: memref<1x32x128xf32, #tpu.memory_space<vmem>>) attributes {dimension_semantics = [#tpu.dimension_semantics<parallel>, #tpu.dimension_semantics<arbitrary>], iteration_bounds = array<i64: 2, 1>, scalar_prefetch = 0 : i64, scratch_operands = 0 : i64, tpu.core_type = #tpu.core_type<tc>, window_params = [{transform_indices = @transform_0, window_bounds = array<i64: 512, 128>}, {transform_indices = @transform_1, window_bounds = array<i64: 512, 128>}, {transform_indices = @transform_2, window_bounds = array<i64: 1, 32, 128>}]} {
    %c1_i32 = arith.constant 1 : i32
    %0 = arith.muli %arg0, %c1_i32 : i32
    %1 = arith.addi %0, %arg1 : i32
    %c0_i32 = arith.constant 0 : i32
    %2 = arith.cmpi eq, %arg1, %c0_i32 : i32
    %3 = arith.extui %2 : i1 to i32
    %c0_i32_0 = arith.constant 0 : i32
    %4 = arith.cmpi ne, %3, %c0_i32_0 : i32
    scf.if %4 {
      %cst_24 = arith.constant 0.000000e+00 : f32
      %32 = vector.broadcast %cst_24 : f32 to vector<1x32x128xf32>
      %c0_25 = arith.constant 0 : index
      %c0_26 = arith.constant 0 : index
      %c0_27 = arith.constant 0 : index
      %33 = vector.load %arg4[%c0_25, %c0_26, %c0_27] : memref<1x32x128xf32, #tpu.memory_space<vmem>>, vector<1x32x128xf32>
      tpu.vector_store %arg4[%c0_25, %c0_26, %c0_27], %32 {strides = array<i32>} : memref<1x32x128xf32, #tpu.memory_space<vmem>>, vector<1x32x128xf32>,
    } else {
    }
    %cst = arith.constant 0.000000e+00 : f32
    %5 = vector.broadcast %cst : f32 to vector<8x128xf32>
    %c0_i32_1 = arith.constant 0 : i32
    %c2_i32 = arith.constant 2 : i32
    %6 = arith.addi %c0_i32_1, %c2_i32 : i32
    %c1_i32_2 = arith.constant 1 : i32
    %7:4 = scf.for %arg5 = %c0_i32_1 to %6 step %c1_i32_2 iter_args(%arg6 = %5, %arg7 = %5, %arg8 = %5, %arg9 = %5) -> (vector<8x128xf32>, vector<8x128xf32>, vector<8x128xf32>, vector<8x128xf32>)  : i32 {
      %c256_i32 = arith.constant 256 : i32
      %32 = arith.muli %arg5, %c256_i32 : i32
      %33 = tpu.assume_multiple %32, 256 : i32
      %34 = arith.index_cast %33 : i32 to index
      %c0_24 = arith.constant 0 : index
      %35 = vector.load %arg2[%34, %c0_24] : memref<512x128xf32, #tpu.memory_space<vmem>>, vector<256x128xf32>
      %36 = arith.index_cast %33 : i32 to index
      %c0_25 = arith.constant 0 : index
      %37 = vector.load %arg3[%36, %c0_25] : memref<512x128xf32, #tpu.memory_space<vmem>>, vector<256x128xf32>
      %c512_i32 = arith.constant 512 : i32
      %38 = arith.muli %1, %c512_i32 : i32
      %39 = arith.addi %38, %33 : i32
      %40 = tpu.iota {dimensions = array<i32: 0>} : vector<256x128xi32>
      %41 = vector.broadcast %39 : i32 to vector<256x128xi32>
      %42 = arith.addi %41, %40 : vector<256x128xi32>
      %43 = tpu.iota {dimensions = array<i32: 1>} : vector<256x128xi32>
      %c128_i32 = arith.constant 128 : i32
      %44 = vector.broadcast %c128_i32 : i32 to vector<256x128xi32>
      %45 = arith.muli %42, %44 : vector<256x128xi32>
      %46 = arith.addi %45, %43 : vector<256x128xi32>
      %c76800_i32 = arith.constant 76800 : i32
      %47 = vector.broadcast %c76800_i32 : i32 to vector<256x128xi32>
      %48 = arith.cmpi slt, %46, %47 : vector<256x128xi32>
      %cst_26 = arith.constant -1.000000e+02 : f32
      %49 = vector.broadcast %cst_26 : f32 to vector<256x128xf32>
      %50 = arith.select %48, %35, %49 : vector<256x128xi1>, vector<256x128xf32>
      %cst_27 = arith.constant 0.000000e+00 : f32
      %51 = vector.broadcast %cst_27 : f32 to vector<256x128xf32>
      %52 = arith.select %48, %37, %51 : vector<256x128xi1>, vector<256x128xf32>
      %53 = math.absf %50 : vector<256x128xf32>
      %cst_28 = arith.constant 0.000000e+00 : f32
      %54 = vector.broadcast %cst_28 : f32 to vector<256x128xf32>
      %55 = arith.subf %54, %53 : vector<256x128xf32>
      %56 = math.exp %55 : vector<256x128xf32>
      %cst_29 = arith.constant 1.000000e+00 : f32
      %57 = vector.broadcast %cst_29 : f32 to vector<256x128xf32>
      %58 = arith.addf %57, %56 : vector<256x128xf32>
      %cst_30 = arith.constant 0.000000e+00 : f32
      %59 = vector.broadcast %cst_30 : f32 to vector<256x128xf32>
      %60 = arith.maximumf %50, %59 : vector<256x128xf32>
      %61 = arith.mulf %50, %52 : vector<256x128xf32>
      %62 = arith.subf %60, %61 : vector<256x128xf32>
      %63 = math.log %58 : vector<256x128xf32>
      %64 = arith.addf %62, %63 : vector<256x128xf32>
      %65 = tpu.reciprocal %58 {approx = true} : vector<256x128xf32> -> vector<256x128xf32>
      %cst_31 = arith.constant 0.000000e+00 : f32
      %66 = vector.broadcast %cst_31 : f32 to vector<256x128xf32>
      %67 = arith.cmpf oge, %50, %66 : vector<256x128xf32>
      %68 = arith.mulf %56, %65 : vector<256x128xf32>
      %69 = arith.select %67, %65, %68 : vector<256x128xi1>, vector<256x128xf32>
      %70 = vector.shape_cast %64 : vector<256x128xf32> to vector<32x8x128xf32>
      %cst_32 = arith.constant dense<0.000000e+00> : vector<8x128xf32>
      %71 = vector.multi_reduction <add>, %70, %cst_32 [0] : vector<32x8x128xf32> to vector<8x128xf32>
      %72 = arith.addf %arg6, %71 : vector<8x128xf32>
      %73 = arith.mulf %69, %52 : vector<256x128xf32>
      %74 = vector.shape_cast %73 : vector<256x128xf32> to vector<32x8x128xf32>
      %cst_33 = arith.constant dense<0.000000e+00> : vector<8x128xf32>
      %75 = vector.multi_reduction <add>, %74, %cst_33 [0] : vector<32x8x128xf32> to vector<8x128xf32>
      %76 = arith.addf %arg7, %75 : vector<8x128xf32>
      %77 = vector.shape_cast %69 : vector<256x128xf32> to vector<32x8x128xf32>
      %cst_34 = arith.constant dense<0.000000e+00> : vector<8x128xf32>
      %78 = vector.multi_reduction <add>, %77, %cst_34 [0] : vector<32x8x128xf32> to vector<8x128xf32>
      %79 = arith.addf %arg8, %78 : vector<8x128xf32>
      %80 = vector.shape_cast %52 : vector<256x128xf32> to vector<32x8x128xf32>
      %cst_35 = arith.constant dense<0.000000e+00> : vector<8x128xf32>
      %81 = vector.multi_reduction <add>, %80, %cst_35 [0] : vector<32x8x128xf32> to vector<8x128xf32>
      %82 = arith.addf %arg9, %81 : vector<8x128xf32>
      scf.yield %72, %76, %79, %82 : vector<8x128xf32>, vector<8x128xf32>, vector<8x128xf32>, vector<8x128xf32>
    }
    %c2_i32_3 = arith.constant 2 : i32
    %c0 = arith.constant 0 : index
    %c0_4 = arith.constant 0 : index
    %c0_5 = arith.constant 0 : index
    %8 = vector.load %arg4[%c0, %c0_4, %c0_5] : memref<1x32x128xf32, #tpu.memory_space<vmem>>, vector<1x8x128xf32>
    %9 = vector.shape_cast %8 : vector<1x8x128xf32> to vector<8x128xf32>
    %10 = arith.addf %9, %7#0 : vector<8x128xf32>
    %c0_6 = arith.constant 0 : index
    %c0_7 = arith.constant 0 : index
    %c0_8 = arith.constant 0 : index
    %11 = vector.load %arg4[%c0_6, %c0_7, %c0_8] : memref<1x32x128xf32, #tpu.memory_space<vmem>>, vector<1x8x128xf32>
    %12 = vector.shape_cast %11 : vector<1x8x128xf32> to vector<8x128xf32>
    %13 = vector.shape_cast %10 : vector<8x128xf32> to vector<1x8x128xf32>
    tpu.vector_store %arg4[%c0_6, %c0_7, %c0_8], %13 {strides = array<i32>} : memref<1x32x128xf32, #tpu.memory_space<vmem>>, vector<1x8x128xf32>,
    %c0_9 = arith.constant 0 : index
    %c8 = arith.constant 8 : index
    %c0_10 = arith.constant 0 : index
    %14 = vector.load %arg4[%c0_9, %c8, %c0_10] : memref<1x32x128xf32, #tpu.memory_space<vmem>>, vector<1x8x128xf32>
    %15 = vector.shape_cast %14 : vector<1x8x128xf32> to vector<8x128xf32>
    %16 = arith.addf %15, %7#1 : vector<8x128xf32>
    %c0_11 = arith.constant 0 : index
    %c8_12 = arith.constant 8 : index
    %c0_13 = arith.constant 0 : index
    %17 = vector.load %arg4[%c0_11, %c8_12, %c0_13] : memref<1x32x128xf32, #tpu.memory_space<vmem>>, vector<1x8x128xf32>
    %18 = vector.shape_cast %17 : vector<1x8x128xf32> to vector<8x128xf32>
    %19 = vector.shape_cast %16 : vector<8x128xf32> to vector<1x8x128xf32>
    tpu.vector_store %arg4[%c0_11, %c8_12, %c0_13], %19 {strides = array<i32>} : memref<1x32x128xf32, #tpu.memory_space<vmem>>, vector<1x8x128xf32>,
    %c0_14 = arith.constant 0 : index
    %c16 = arith.constant 16 : index
    %c0_15 = arith.constant 0 : index
    %20 = vector.load %arg4[%c0_14, %c16, %c0_15] : memref<1x32x128xf32, #tpu.memory_space<vmem>>, vector<1x8x128xf32>
    %21 = vector.shape_cast %20 : vector<1x8x128xf32> to vector<8x128xf32>
    %22 = arith.addf %21, %7#2 : vector<8x128xf32>
    %c0_16 = arith.constant 0 : index
    %c16_17 = arith.constant 16 : index
    %c0_18 = arith.constant 0 : index
    %23 = vector.load %arg4[%c0_16, %c16_17, %c0_18] : memref<1x32x128xf32, #tpu.memory_space<vmem>>, vector<1x8x128xf32>
    %24 = vector.shape_cast %23 : vector<1x8x128xf32> to vector<8x128xf32>
    %25 = vector.shape_cast %22 : vector<8x128xf32> to vector<1x8x128xf32>
    tpu.vector_store %arg4[%c0_16, %c16_17, %c0_18], %25 {strides = array<i32>} : memref<1x32x128xf32, #tpu.memory_space<vmem>>, vector<1x8x128xf32>,
    %c0_19 = arith.constant 0 : index
    %c24 = arith.constant 24 : index
    %c0_20 = arith.constant 0 : index
    %26 = vector.load %arg4[%c0_19, %c24, %c0_20] : memref<1x32x128xf32, #tpu.memory_space<vmem>>, vector<1x8x128xf32>
    %27 = vector.shape_cast %26 : vector<1x8x128xf32> to vector<8x128xf32>
    %28 = arith.addf %27, %7#3 : vector<8x128xf32>
    %c0_21 = arith.constant 0 : index
    %c24_22 = arith.constant 24 : index
    %c0_23 = arith.constant 0 : index
    %29 = vector.load %arg4[%c0_21, %c24_22, %c0_23] : memref<1x32x128xf32, #tpu.memory_space<vmem>>, vector<1x8x128xf32>
    %30 = vector.shape_cast %29 : vector<1x8x128xf32> to vector<8x128xf32>
    %31 = vector.shape_cast %28 : vector<8x128xf32> to vector<1x8x128xf32>
    tpu.vector_store %arg4[%c0_21, %c24_22, %c0_23], %31 {strides = array<i32>} : memref<1x32x128xf32, #tpu.memory_space<vmem>>, vector<1x8x128xf32>,
    return
  }
  func.func @transform_0(%arg0: i32, %arg1: i32) -> (i32, i32) {
    %c1_i32 = arith.constant 1 : i32
    %0 = arith.muli %arg0, %c1_i32 : i32
    %1 = arith.addi %0, %arg1 : i32
    %c1_i32_0 = arith.constant 1 : i32
    %2 = arith.minsi %1, %c1_i32_0 : i32
    %c0_i32 = arith.constant 0 : i32
    %c0_i32_1 = arith.constant 0 : i32
    return %2, %c0_i32 : i32, i32
  }
  func.func @transform_1(%arg0: i32, %arg1: i32) -> (i32, i32) {
    %c1_i32 = arith.constant 1 : i32
    %0 = arith.muli %arg0, %c1_i32 : i32
    %1 = arith.addi %0, %arg1 : i32
    %c1_i32_0 = arith.constant 1 : i32
    %2 = arith.minsi %1, %c1_i32_0 : i32
    %c0_i32 = arith.constant 0 : i32
    %c0_i32_1 = arith.constant 0 : i32
    return %2, %c0_i32 : i32, i32
  }
  func.func @transform_2(%arg0: i32, %arg1: i32) -> (i32, i32, i32) {
    %c0_i32 = arith.constant 0 : i32
    %c0_i32_0 = arith.constant 0 : i32
    %c0_i32_1 = arith.constant 0 : i32
    return %arg0, %c0_i32, %c0_i32_0 : i32, i32, i32
  }
}

</mosaic_0001>

<bundles_post_ra>
// kernel: tpu_custom_call.1
= control target key start
LH: loop header
LB: loop body
LE: loop exit
PB: predicated region body
PF: predicated region fallthrough
CT: control target
= control target key end

     0   :  { %7 = vsyncpa [#allocation3], 0  ;;  %s3409_s0 = inlined_call_operand.hbm [shape: f32[600,128], index: 0, kind: input, shape index: {}]   ;;  %s3410_s1 = inlined_call_operand.hbm [shape: f32[600,128], index: 1, kind: input, shape index: {}]   ;;  %s3411_s2 = inlined_call_operand.hbm [shape: f32[2,32,128], index: 2, kind: output, shape index: {}]  }
   0x1   :  { %9 = vsyncpa [#allocation3 + $0x1], 0 }
   0x2   :  { %10 = vsyncpa [#allocation6], 0 }
   0x3   :  { %12 = vsyncpa [#allocation6 + $0x1], 0 }
   0x4   :  { %13 = vsyncpa [#allocation4], 0 }
   0x5   :  { %15 = vsyncpa [#allocation4 + $0x1], 0  ;;  %s1952_s9 = smov 0   ;;  %s1954_s10 = smov 0  }
   0x6   :  { %s1956_s11 = smov 0   ;;  %s1958_s12 = smov 0  }
   0x7   :  { %s1960_s13 = smov 0   ;;  %s1962_s14 = smov 0  }
   0x8   :  { %s1964_s15 = smov 0   ;;  %s1966_s16 = smov 0  }
   0x9   :  { %s1968_s17 = smov 0  }
   0xa LB: > { %s1367_s18 = sadd.s32 4294967295, %s1905_s17   ;;  %s1368_s19 = sadd.s32 4294967294, %s1905_s17   ;;  %s1905_s17 = sphi %s1968_s17, %s21_s17   ;;  %s1901_s16 = sphi %s1966_s16, %s3964_s16   ;;  %s1897_s15 = sphi %s1964_s15, %s3963_s15   ;;  %s1893_s14 = sphi %s1962_s14, %s3962_s14   ;;  %s1889_s13 = sphi %s1960_s13, %s3961_s13   ;;  %s1885_s12 = sphi %s1958_s12, %s3960_s12   ;;  %s1881_s11 = sphi %s1956_s11, %s3959_s11   ;;  %s1877_s10 = sphi %s1954_s10, %s3958_s10   ;;  %s1873_s9 = sphi %s1952_s9, %s3957_s9  }
   0xb   : > { %s33_s20 = sadd.s32 1, %s1901_s16  ;;  %p38_p0 = scmp.lt.s32.totalorder %s1901_s16, 1 }
   0xc   : > { %p35_p1 = scmp.ge.s32.totalorder %s33_s20, 2  ;;  %s46_s21 = sadd.s32 1, %s1893_s14 }
   0xd   : > { %s2001_s22 = scalar_select %p38_p0, %s1901_s16, 1 }
   0xe   : > { %s3966_s20 = smov (%p35_p1, %s33_s20), 0  ;;  %p53_p2 = scmp.ne.s32.totalorder %s1893_s14, %s1889_s13 }
   0xf   : > { %3587 = sst [smem:[#allocation11_spill]] %s3966_s20  ;;  %p54_p3 = scmp.eq.s32.totalorder %s1905_s17, 0 }
  0x10   : > { %p41_p4 = scmp.lt.s32.totalorder %s3966_s20, 1  ;;  %p59_p5 = scmp.ne.s32.totalorder %s1889_s13, %s1885_s12 }
  0x11   : > { %p2010_p6 = por %p54_p3, %p53_p2  ;;  %p60_p7 = scmp.eq.s32.totalorder %s1367_s18, 0 }
  0x12   : > { %s42_s24 = scalar_select %p41_p4, %s3966_s20, 1 }
  0x13   : > { %p2015_p8 = por %p60_p7, %p59_p5  ;;  %s101_s26 = ssub.s32 %s1901_s16, %s3966_s20 }
  0x14   : > { %s43_s27 = ssub.s32 %s2001_s22, %s42_s24  ;;  %p102_p9 = scmp.eq.s32.totalorder %s101_s26, 0 }
  0x15   : > { %p44_p10 = scmp.eq.s32.totalorder %s43_s27, 0  ;;  %s104_s28 = sadd.s32 1, %s1881_s11 }
  0x16   : > { %s2024_s29 = scalar_select %p102_p9, %s1881_s11, %s104_s28  }
  0x17   : > { %s2027_s30 = scalar_select %p44_p10, %s1893_s14, %s46_s21  }
  0x18   : > { %p114_p11 = scmp.ne.s32.totalorder %s1881_s11, %s1877_s10  ;;  %p115_p12 = scmp.eq.s32.totalorder %s1367_s18, 1 }
  0x19   : > { %p120_p13 = scmp.ne.s32.totalorder %s1877_s10, %s1873_s9  ;;  %p121_p0 = scmp.eq.s32.totalorder %s1368_s19, 1 }
  0x1a   : > { %p2033_p1 = por %p115_p12, %p114_p11  ;;  %p3413_p3 = scmp.ge.s32.totalorder %s1905_s17, 2 }
  0x1b   : > { %p2037_p2 = por %p121_p0, %p120_p13 }
  0x1c   : > { %s3590_s3 = scalar_select %p2033_p1, 1, 0 }
  0x1d   : > { %s3591_s4 = scalar_select %p2037_p2, 1, 0 }
  0x1e   : > { %137 = sbr.rel (%p3413_p3) target bundleno = 107 (0x6b), region = 16 }
  0x25   : > { %140 = sbr.rel (!%p2010_p6) target bundleno = 72 (0x48), region = 20  ;;  %s141_s5 = sand.u32 (%p2010_p6), 1, %s1893_s14  }
  0x26   : > { %s1372_s6 = sshll.u32 (%p2010_p6), %s2001_s22, 6  ;;  %s1371_s7 = sshll.u32 (%p2010_p6), %s141_s5, 9 }
  0x27   : > { %s150_s8 = ssub.s32 (%p2010_p6), 75, %s1372_s6  ;;  %s2051_s19 = scalar_lea.sflag (%p2010_p6), [#allocation3], %s141_s5 }
  0x28   : > { %p151_p4 = scmp.lt.s32.totalorder (%p2010_p6), %s150_s8, 64  ;;  %s145_s21 = scalar_lea.vmem (%p2010_p6), [#allocation2], %s1371_s7 }
  0x2c   : > { %s3968_s8 = smov (!%p151_p4, %s150_s8), 64 }
  0x2d   : > { %s2048_s12 = sshll.u32 %s3968_s8, 7 }
  0x2e   : > { %s155_s18 = ssub.s32 8192, %s2048_s12 }
  0x2f   : > { %156 = vsyncadd %s2051_s19, %s155_s18  ;;  %p1374_p5 = scmp.ne.s32.totalorder %s2048_s12, 0  ;;  %s1396_s24 = sshll.u32 %s2001_s22, 13 }
  0x30   : > { %s2059_s28 = scalar_lea.hbm %s3409_s0, %s1396_s24  ;;  %s161_s5 = sshll.u32 %s145_s21, 4  ;;  %s2061_s5 = int_to_ptr.vmem [resolvable:$true] %s161_s5 }
  0x31   : > { %s1719_s6 = scalar_lea.hbm %s2059_s28, %s2048_s12  ;;  %s1723_s18 = scalar_lea.hbm %s3409_s0, 9600 }
  0x32   : > { %p1720_p7 = scmp.ne.s32.totalorder %s2059_s28, %s1719_s6  ;;  %p1724_p11 = scmp.lt.u32.totalorder %s2059_s28, %s3409_s0 }
  0x33   : > { %p1725_p12 = scmp.lt.u32.totalorder %s1723_s18, %s1719_s6  ;;  %p1727_p0 = scmp.lt.u32.totalorder %s1719_s6, %s2059_s28 }
  0x34   : > { %p1721_p9 = pnand %p1720_p7, %p1374_p5 }
  0x35   : > { %p1726_p13 = por %p1725_p12, %p1724_p11 }
  0x36   : > { %p1722_p10 = pneg %p1721_p9 }
  0x37   : > { %p1728_p4 = por %p1727_p0, %p1726_p13 }
  0x39   : > { %p1729_p3 = pnand %p1728_p4, %p1722_p10 }
  0x3b   : > { %1732 = shalt.err (!%p1729_p3)
}
  0x3c   : > { %s1733_s21 = scalar_lea.vmem %s2061_s5, %s2048_s12  ;;  %s1927_s24 = smov [#allocation2]  }
  0x3d   : > { %p1734_p7 = scmp.ne.s32.totalorder %s2061_s5, %s1733_s21  ;;  %s1737_s27 = sshll.u32 %s1927_s24, 4  ;;  %s1738_s27 = int_to_ptr.vmem [resolvable:$false] %s1737_s27 }
  0x3e   : > { %s1739_s20 = scalar_lea.vmem %s1738_s27, 16384  ;;  %p1740_p1 = scmp.lt.s32.totalorder %s2061_s5, %s1738_s27 }
  0x3f   : > { %p1735_p9 = pnand %p1734_p7, %p1374_p5  ;;  %p1741_p11 = scmp.lt.s32.totalorder %s1739_s20, %s1733_s21 }
  0x41   : > { %p1736_p2 = pneg %p1735_p9  ;;  %p1742_p12 = por %p1741_p11, %p1740_p1 }
  0x43   : > { %p1743_p13 = pnand %p1742_p12, %p1736_p2 }
  0x45   : > { %1746 = shalt.err (!%p1743_p13)
}
  0x46   : > { %s1928_s6 = smov 128   ;;  %s1929_s7 = smov 8  }
  0x47   : > { %167 = dma.hbm_to_vmem [thread:$0]  (%p1374_p5), %s2059_s28, %s2048_s12, %s2061_s5, %s2051_s19, %s1928_s6, %s1928_s6, %s1929_s7  }
  0x48 PF: > { %170 = sbr.rel (!%p2010_p6) target bundleno = 107 (0x6b), region = 24  ;;  %s171_s8 = sand.u32 (%p2010_p6), 1, %s1893_s14  }
  0x49   : > { %s1379_s18 = sshll.u32 (%p2010_p6), %s2001_s22, 6  ;;  %s1378_s26 = sshll.u32 (%p2010_p6), %s171_s8, 9 }
  0x4a   : > { %s180_s21 = ssub.s32 (%p2010_p6), 75, %s1379_s18  ;;  %s2095_s20 = scalar_lea.sflag (%p2010_p6), [#allocation6], %s171_s8 }
  0x4b   : > { %p181_p1 = scmp.lt.s32.totalorder (%p2010_p6), %s180_s21, 64  ;;  %s175_s12 = scalar_lea.vmem (%p2010_p6), [#allocation5], %s1378_s26 }
  0x4f   : > { %s3970_s21 = smov (!%p181_p1, %s180_s21), 64 }
  0x50   : > { %s2092_s24 = sshll.u32 %s3970_s21, 7 }
  0x51   : > { %s185_s27 = ssub.s32 8192, %s2092_s24 }
  0x52   : > { %186 = vsyncadd %s2095_s20, %s185_s27  ;;  %p1381_p6 = scmp.ne.s32.totalorder %s2092_s24, 0  ;;  %s1397_s23 = sshll.u32 %s2001_s22, 13 }
  0x53   : > { %s2103_s5 = scalar_lea.hbm %s3410_s1, %s1397_s23  ;;  %s191_s6 = sshll.u32 %s175_s12, 4  ;;  %s2105_s6 = int_to_ptr.vmem [resolvable:$true] %s191_s6 }
  0x54   : > { %s1747_s7 = scalar_lea.hbm %s2103_s5, %s2092_s24  ;;  %s1751_s22 = scalar_lea.hbm %s3410_s1, 9600 }
  0x55   : > { %p1748_p2 = scmp.ne.s32.totalorder %s2103_s5, %s1747_s7  ;;  %p1752_p10 = scmp.lt.u32.totalorder %s2103_s5, %s3410_s1 }
  0x56   : > { %p1753_p0 = scmp.lt.u32.totalorder %s1751_s22, %s1747_s7  ;;  %p1755_p7 = scmp.lt.u32.totalorder %s1747_s7, %s2103_s5 }
  0x57   : > { %p1749_p3 = pnand %p1748_p2, %p1381_p6 }
  0x58   : > { %p1754_p4 = por %p1753_p0, %p1752_p10 }
  0x59   : > { %p1750_p5 = pneg %p1749_p3 }
  0x5a   : > { %p1756_p9 = por %p1755_p7, %p1754_p4 }
  0x5c   : > { %p1757_p11 = pnand %p1756_p9, %p1750_p5 }
  0x5e   : > { %1760 = shalt.err (!%p1757_p11)
}
  0x5f   : > { %s1761_s27 = scalar_lea.vmem %s2105_s6, %s2092_s24  ;;  %s1930_s12 = smov [#allocation5]  }
  0x60   : > { %p1762_p12 = scmp.ne.s32.totalorder %s2105_s6, %s1761_s27  ;;  %s1765_s23 = sshll.u32 %s1930_s12, 4  ;;  %s1766_s23 = int_to_ptr.vmem [resolvable:$false] %s1765_s23 }
  0x61   : > { %s1767_s19 = scalar_lea.vmem %s1766_s23, 16384  ;;  %p1768_p2 = scmp.lt.s32.totalorder %s2105_s6, %s1766_s23 }
  0x62   : > { %p1763_p13 = pnand %p1762_p12, %p1381_p6  ;;  %p1769_p3 = scmp.lt.s32.totalorder %s1767_s19, %s1761_s27 }
  0x64   : > { %p1764_p1 = pneg %p1763_p13  ;;  %p1770_p10 = por %p1769_p3, %p1768_p2 }
  0x66   : > { %p1771_p0 = pnand %p1770_p10, %p1764_p1 }
  0x68   : > { %1774 = shalt.err (!%p1771_p0)
}
  0x69   : > { %s1931_s28 = smov 128   ;;  %s1932_s7 = smov 8  }
  0x6a   : > { %197 = dma.hbm_to_vmem [thread:$0]  (%p1381_p6), %s2103_s5, %s2092_s24, %s2105_s6, %s2095_s20, %s1931_s28, %s1931_s28, %s1932_s7  }
  0x6b PF: > { %p1385_p5 = scmp.ge.s32.totalorder %s1905_s17, 1  ;;  %p199_p4 = scmp.lt.s32.totalorder %s1905_s17, 3 }
  0x6d   : > { %p200_p7 = pnand %p1385_p5, %p199_p4 }
  0x6e   : > { %s205_s8 = sand.u32 (!%p200_p7), 1, %s1889_s13  }
  0x6f   : > { %203 = sbr.rel (%p200_p7) target bundleno = 391 (0x187), region = 28  ;;  %s1386_s18 = sshll.u32 (!%p200_p7), %s205_s8, 9 }
  0x70   : > { %s206_s22 = scalar_lea.sflag (!%p200_p7), [#allocation3], %s205_s8  ;;  %s2135_s26 = scalar_lea.vmem (!%p200_p7), [#allocation2], %s1386_s18 }
  0x76   : > { %1860 = dma.done.wait (%p2015_p8), %s206_s22, 8192  }
  0x77   : > { %1862 = vsyncadd (%p2015_p8), %s206_s22, 4294959104  ;;  %s215_s24 = scalar_lea.sflag [#allocation6], %s205_s8  ;;  %s2141_s20 = scalar_lea.vmem [#allocation5], %s1386_s18 }
  0x78   : > { %1864 = dma.done.wait (%p2015_p8), %s215_s24, 8192  }
  0x79   : > { %1866 = vsyncadd (%p2015_p8), %s215_s24, 4294959104  ;;  %s241_s5 = sand.u32 1, %s1877_s10   ;;  %v1933_v0 = vmov 0.0   ;;  %v2156_v1 = vmov 0.0   ;;  %v2158_v2 = vmov 0.0   ;;  %v2160_v3 = vmov 0.0  }
  0x7a   : > { %s1388_s6 = sshll.u32 %s241_s5, 5  ;;  %v2162_v4 = vmov 0.0   ;;  %s2164_s25 = smov 0  }
  0x7b   : > { %s2150_s21 = scalar_lea.vmem [#allocation7], %s1388_s6 }
  0x7c   : > { %265 = vst [vmem:[%s2150_s21] sm:$0xff] %v1933_v0  ;;  %266 = vst [vmem:[%s2150_s21 + $0x8] sm:$0xff] %v1933_v0 }
  0x7d   : > { %267 = vst [vmem:[%s2150_s21 + $0x10] sm:$0xff] %v1933_v0  ;;  %268 = vst [vmem:[%s2150_s21 + $0x18] sm:$0xff] %v1933_v0 }
  0x7e LB: >> { %3592 = vst [vmem:[#allocation12_spill] sm:$0xff] %v1909_v1  ;;  %3593 = vst [vmem:[#allocation13_spill] sm:$0xff] %v1913_v2  ;;  %v348_v5 = vlaneseq  ;;  %s2182_s27 = sshll.u32 %s1925_s25, 8  ;;  %s1390_s12 = sshll.u32 %s1897_s15, 9  ;;  %s1925_s25 = sphi %s2164_s25, %s274_s25   ;;  %v1921_v4 = vphi %v2162_v4, %v3952_v4   ;;  %v1917_v3 = vphi %v2160_v3, %v3951_v3   ;;  %v1913_v2 = vphi %v2158_v2, %v3950_v2   ;;  %v1909_v1 = vphi %v2156_v1, %v3949_v1  }
  0x7f   : >> { %3594 = vst [vmem:[#allocation14_spill] sm:$0xff] %v1917_v3  ;;  %3595 = vst [vmem:[#allocation15_spill] sm:$0xff] %v1921_v4  ;;  %s347_s23 = sadd.s32 %s1390_s12, %s2182_s27  ;;  %s2357_s19 = scalar_lea.vmem %s2135_s26, %s2182_s27 [#allocation2] }
  0x80   : >> { %v349_v6 = vshrl.u32 %v348_v5, 7  ;;  %v2188_v8 = vstv %s347_s23  ;;  %v2190_v11 = vand.u32 127, %v348_v5  ;;  %s2421_s28 = scalar_lea.vmem %s2141_s20, %s2182_s27 [#allocation5]  ;;  %v305_v2 = vld [vmem:[%s2357_s19 + $0xc0] sm:$0xff]  ;;  %v306_v3 = vld [vmem:[%s2357_s19 + $0xc8] sm:$0xff]  ;;  %v307_v1 = vld [vmem:[%s2357_s19 + $0xd0] sm:$0xff]  ;;  %s274_s25 = sadd.s32 1, %s1925_s25  }
  0x81   : >> { %p271_p8 = scmp.ge.s32.totalorder %s274_s25, 2  }
  0x82   : >> { %v350_v7 = vadd.s32 8, %v349_v6  ;;  %v351_v9 = vadd.s32 16, %v349_v6  ;;  %v352_v10 = vadd.s32 24, %v349_v6  ;;  %v353_v12 = vadd.s32 32, %v349_v6  ;;  %s3339_s18 = scalar_lea.hbm (%p271_p8), %s3411_s2, %s1390_s12  ;;  %s1242_s22 = sshll.u32 (%p271_p8), %s2150_s21, 4  ;;  %s3345_s22 = int_to_ptr.vmem [resolvable:$true] %s1242_s22 }
  0x83   : >> { %v354_v13 = vadd.s32 40, %v349_v6  ;;  %v355_v14 = vadd.s32 48, %v349_v6  ;;  %v2193_v15 = vadd.s32 %v2188_v8, %v349_v6  ;;  %v356_v16 = vadd.s32 56, %v349_v6  ;;  %s3353_s15 = scalar_lea.sflag (%p271_p8), [#allocation4], %s241_s5  ;;  %s1775_s26 = scalar_lea.vmem (%p271_p8), %s3345_s22, 512 }
  0x84   : >> { %v357_v17 = vadd.s32 64, %v349_v6  ;;  %v358_v18 = vadd.s32 72, %v349_v6  ;;  %v2196_v19 = vadd.s32 %v2188_v8, %v350_v7  ;;  %v359_v20 = vadd.s32 80, %v349_v6  ;;  %p1776_p6 = scmp.ne.s32.totalorder (%p271_p8), %s3345_s22, %s1775_s26  ;;  %p3953_p9 = scmp.ne.s32.totalorder (%p271_p8), %s3590_s3, 0 }
  0x85   : >> { %v360_v21 = vadd.s32 88, %v349_v6  ;;  %v361_v22 = vadd.s32 96, %v349_v6  ;;  %v2199_v23 = vadd.s32 %v2188_v8, %v351_v9  ;;  %v362_v24 = vadd.s32 104, %v349_v6  ;;  %s1934_s24 = smov (%p271_p8), [#allocation7]  }
  0x86   : >> { %v363_v25 = vadd.s32 112, %v349_v6  ;;  %v364_v26 = vadd.s32 120, %v349_v6  ;;  %v2202_v27 = vadd.s32 %v2188_v8, %v352_v10  ;;  %v365_v28 = vadd.s32 128, %v349_v6  ;;  %p1777_p11 = pnand (%p271_p8), %p1776_p6, %p3953_p9  ;;  %s1779_s20 = sshll.u32 (%p271_p8), %s1934_s24, 4  ;;  %s1780_s20 = int_to_ptr.vmem [resolvable:$false] %s1779_s20 }
  0x87   : >> { %v366_v29 = vadd.s32 136, %v349_v6  ;;  %v367_v30 = vadd.s32 144, %v349_v6  ;;  %v2205_v31 = vadd.s32 %v2188_v8, %v353_v12  ;;  %v368_v32 = vadd.s32 152, %v349_v6  ;;  %s1781_s6 = scalar_lea.vmem (%p271_p8), %s1780_s20, 1024  ;;  %p1782_p13 = scmp.lt.s32.totalorder (%p271_p8), %s3345_s22, %s1780_s20 }
  0x88   : >> { %v369_v33 = vadd.s32 160, %v349_v6  ;;  %v370_v34 = vadd.s32 168, %v349_v6  ;;  %v387_v35 = vadd.s32 %v2188_v8, %v354_v13  ;;  %v371_v36 = vadd.s32 176, %v349_v6  ;;  %p1778_p12 = pneg (%p271_p8), %p1777_p11  ;;  %p1783_p1 = scmp.lt.s32.totalorder (%p271_p8), %s1781_s6, %s1775_s26 }
  0x89   : >> { %v372_v37 = vadd.s32 184, %v349_v6  ;;  %v373_v38 = vadd.s32 192, %v349_v6  ;;  %v388_v39 = vadd.s32 %v2188_v8, %v355_v14  ;;  %v374_v40 = vadd.s32 200, %v349_v6 }
  0x8a   : >> { %v375_v41 = vadd.s32 208, %v349_v6  ;;  %v376_v42 = vadd.s32 216, %v349_v6  ;;  %v389_v43 = vadd.s32 %v2188_v8, %v356_v16  ;;  %v377_v44 = vadd.s32 224, %v349_v6  ;;  %p1784_p2 = por (%p271_p8), %p1783_p1, %p1782_p13 }
  0x8b   : >> { %v378_v45 = vadd.s32 232, %v349_v6  ;;  %v379_v46 = vadd.s32 240, %v349_v6  ;;  %v390_v47 = vadd.s32 %v2188_v8, %v357_v17  ;;  %v380_v48 = vadd.s32 248, %v349_v6 }
  0x8c   : >> { %v391_v49 = vadd.s32 %v2188_v8, %v358_v18  ;;  %v392_v50 = vadd.s32 %v2188_v8, %v359_v20  ;;  %v393_v51 = vadd.s32 %v2188_v8, %v360_v21  ;;  %v394_v52 = vadd.s32 %v2188_v8, %v361_v22  ;;  %p1785_p3 = pnand (%p271_p8), %p1784_p2, %p1778_p12 }
  0x8d   : >> { %v395_v53 = vadd.s32 %v2188_v8, %v362_v24  ;;  %v396_v54 = vadd.s32 %v2188_v8, %v363_v25  ;;  %v397_v55 = vadd.s32 %v2188_v8, %v364_v26  ;;  %v2219_v56 = vadd.s32 %v2188_v8, %v365_v28 }
  0x8e   : >> { %v2222_v57 = vadd.s32 %v2188_v8, %v366_v29  ;;  %v2225_v58 = vadd.s32 %v2188_v8, %v367_v30  ;;  %v2228_v59 = vadd.s32 %v2188_v8, %v368_v32  ;;  %v2231_v60 = vadd.s32 %v2188_v8, %v369_v33 }
  0x8f   : >> { %v2234_v61 = vadd.s32 %v2188_v8, %v370_v34  ;;  %v416_v62 = vmul.u32 128, %v2193_v15  ;;  %v417_v63 = vmul.u32 128, %v2196_v19  ;;  %v2239_v0 = vadd.s32 %v2188_v8, %v371_v36 }
  0x90   : >> { %v2242_v5 = vadd.s32 %v2188_v8, %v372_v37  ;;  %v418_v6 = vmul.u32 128, %v2199_v23  ;;  %v419_v7 = vmul.u32 128, %v2202_v27  ;;  %v406_v9 = vadd.s32 %v2188_v8, %v373_v38 }
  0x91   : >> { %v407_v10 = vadd.s32 %v2188_v8, %v374_v40  ;;  %v420_v12 = vmul.u32 128, %v2205_v31  ;;  %v421_v13 = vmul.u32 128, %v387_v35  ;;  %v408_v14 = vadd.s32 %v2188_v8, %v375_v41 }
  0x92   : >> { %v409_v15 = vadd.s32 %v2188_v8, %v376_v42  ;;  %v422_v16 = vmul.u32 128, %v388_v39  ;;  %v423_v17 = vmul.u32 128, %v389_v43  ;;  %v410_v18 = vadd.s32 %v2188_v8, %v377_v44 }
  0x93   : >> { %v411_v19 = vadd.s32 %v2188_v8, %v378_v45  ;;  %v424_v20 = vmul.u32 128, %v390_v47  ;;  %v425_v21 = vmul.u32 128, %v391_v49  ;;  %v412_v22 = vadd.s32 %v2188_v8, %v379_v46 }
  0x94   : >> { %v413_v23 = vadd.s32 %v2188_v8, %v380_v48  ;;  %v426_v24 = vmul.u32 128, %v392_v50  ;;  %v427_v25 = vmul.u32 128, %v393_v51  ;;  %v2256_v28 = vadd.s32 %v416_v62, %v2190_v11 }
  0x95   : >> { %v428_v26 = vmul.u32 128, %v394_v52  ;;  %v429_v27 = vmul.u32 128, %v395_v53  ;;  %v2259_v29 = vadd.s32 %v417_v63, %v2190_v11  ;;  %v2262_v32 = vadd.s32 %v418_v6, %v2190_v11 }
  0x96   : >> { %v430_v30 = vmul.u32 128, %v396_v54  ;;  %v431_v31 = vmul.u32 128, %v397_v55  ;;  %v2265_v33 = vadd.s32 %v419_v7, %v2190_v11  ;;  %v2270_v35 = vadd.s32 %v420_v12, %v2190_v11 }
  0x97   : >> { %v432_v8 = vmul.u32 128, %v2219_v56  ;;  %v433_v34 = vmul.u32 128, %v2222_v57  ;;  %v2273_v36 = vadd.s32 %v421_v13, %v2190_v11  ;;  %v2278_v39 = vadd.s32 %v422_v16, %v2190_v11 }
  0x98   : >> { %v434_v37 = vmul.u32 128, %v2225_v58  ;;  %v435_v38 = vmul.u32 128, %v2228_v59  ;;  %v2281_v40 = vadd.s32 %v423_v17, %v2190_v11  ;;  %v2286_v43 = vadd.s32 %v424_v20, %v2190_v11  ;;  %v283_v20 = vld [vmem:[%s2357_s19 + $0x10] sm:$0xff] }
  0x99   : >> { %v436_v41 = vmul.u32 128, %v2231_v60  ;;  %v437_v42 = vmul.u32 128, %v2234_v61  ;;  %v2289_v44 = vadd.s32 %v425_v21, %v2190_v11  ;;  %v2294_v47 = vadd.s32 %v426_v24, %v2190_v11  ;;  %v284_v21 = vld [vmem:[%s2357_s19 + $0x18] sm:$0xff]  ;;  %v287_v24 = vld [vmem:[%s2357_s19 + $0x30] sm:$0xff] }
  0x9a   : >> { %v438_v45 = vmul.u32 128, %v2239_v0  ;;  %v439_v46 = vmul.u32 128, %v2242_v5  ;;  %v2297_v48 = vadd.s32 %v427_v25, %v2190_v11  ;;  %v2300_v51 = vadd.s32 %v428_v26, %v2190_v11  ;;  %v288_v25 = vld [vmem:[%s2357_s19 + $0x38] sm:$0xff]  ;;  %v289_v26 = vld [vmem:[%s2357_s19 + $0x40] sm:$0xff] }
  0x9b   : >> { %v440_v49 = vmul.u32 128, %v406_v9  ;;  %v441_v50 = vmul.u32 128, %v407_v10  ;;  %v2303_v52 = vadd.s32 %v429_v27, %v2190_v11  ;;  %v2306_v55 = vadd.s32 %v430_v30, %v2190_v11  ;;  %v290_v27 = vld [vmem:[%s2357_s19 + $0x48] sm:$0xff]  ;;  %v291_v30 = vld [vmem:[%s2357_s19 + $0x50] sm:$0xff] }
  0x9c   : >> { %v442_v53 = vmul.u32 128, %v408_v14  ;;  %v443_v54 = vmul.u32 128, %v409_v15  ;;  %v2309_v56 = vadd.s32 %v431_v31, %v2190_v11  ;;  %v2312_v59 = vadd.s32 %v432_v8, %v2190_v11  ;;  %v292_v31 = vld [vmem:[%s2357_s19 + $0x58] sm:$0xff]  ;;  %v293_v8 = vld [vmem:[%s2357_s19 + $0x60] sm:$0xff] }
  0x9d   : >> { %v444_v57 = vmul.u32 128, %v410_v18  ;;  %v445_v58 = vmul.u32 128, %v411_v19  ;;  %v2315_v60 = vadd.s32 %v433_v34, %v2190_v11  ;;  %v2318_v63 = vadd.s32 %v434_v37, %v2190_v11  ;;  %v282_v19 = vld [vmem:[%s2357_s19 + $0x8] sm:$0xff]  ;;  %v295_v37 = vld [vmem:[%s2357_s19 + $0x70] sm:$0xff] }
  0x9e   : >> { %v446_v61 = vmul.u32 128, %v412_v22  ;;  %v447_v62 = vmul.u32 128, %v413_v23  ;;  %v2321_v0 = vadd.s32 %v435_v38, %v2190_v11  ;;  %v2324_v5 = vadd.s32 %v436_v41, %v2190_v11  ;;  %v285_v22 = vld [vmem:[%s2357_s19 + $0x20] sm:$0xff]  ;;  %v286_v23 = vld [vmem:[%s2357_s19 + $0x28] sm:$0xff]  ;;  %v296_v38 = vld [vmem:[%s2357_s19 + $0x78] sm:$0xff] }
  0x9f   : >> { %v2327_v6 = vadd.s32 %v437_v42, %v2190_v11  ;;  %v2330_v7 = vadd.s32 %v438_v45, %v2190_v11  ;;  %v2333_v9 = vadd.s32 %v439_v46, %v2190_v11  ;;  %v2336_v10 = vadd.s32 %v440_v49, %v2190_v11  ;;  %v294_v34 = vld [vmem:[%s2357_s19 + $0x68] sm:$0xff]  ;;  %v297_v41 = vld [vmem:[%s2357_s19 + $0x80] sm:$0xff]  ;;  %v299_v45 = vld [vmem:[%s2357_s19 + $0x90] sm:$0xff] }
  0xa0   : >> { %v2339_v12 = vadd.s32 %v441_v50, %v2190_v11  ;;  %v2342_v13 = vadd.s32 %v442_v53, %v2190_v11  ;;  %v2345_v14 = vadd.s32 %v443_v54, %v2190_v11  ;;  %v2348_v15 = vadd.s32 %v444_v57, %v2190_v11  ;;  %v298_v42 = vld [vmem:[%s2357_s19 + $0x88] sm:$0xff]  ;;  %v300_v46 = vld [vmem:[%s2357_s19 + $0x98] sm:$0xff]  ;;  %v301_v49 = vld [vmem:[%s2357_s19 + $0xa0] sm:$0xff] }
  0xa1   : >> { %v2351_v16 = vadd.s32 %v445_v58, %v2190_v11  ;;  %vm480_vm0 = vcmp.lt.s32.totalorder %v2256_v28, 76800  ;;  %vm481_vm1 = vcmp.lt.s32.totalorder %v2259_v29, 76800  ;;  %v2360_v17 = vadd.s32 %v446_v61, %v2190_v11  ;;  %v302_v50 = vld [vmem:[%s2357_s19 + $0xa8] sm:$0xff]  ;;  %v303_v53 = vld [vmem:[%s2357_s19 + $0xb0] sm:$0xff]  ;;  %v304_v54 = vld [vmem:[%s2357_s19 + $0xb8] sm:$0xff] }
  0xa2   : >> { %3596 = vst [vmem:[#allocation16_spill] sm:$0xff] %v2342_v13  ;;  %3597 = vst [vmem:[#allocation17_spill] sm:$0xff] %v2345_v14  ;;  %v2363_v18 = vadd.s32 %v447_v62, %v2190_v11  ;;  %vm482_vm2 = vcmp.lt.s32.totalorder %v2262_v32, 76800  ;;  %vm483_vm3 = vcmp.lt.s32.totalorder %v2265_v33, 76800  ;;  %vm484_vm4 = vcmp.lt.s32.totalorder %v2270_v35, 76800  ;;  %v281_v11 = vld [vmem:[%s2357_s19] sm:$0xff] }
  0xa3   : >> { %3598 = vst [vmem:[#allocation18_spill] sm:$0xff] %v2351_v16  ;;  %3599 = vst [vmem:[#allocation19_spill] sm:$0xff] %v2360_v17  ;;  %vm485_vm5 = vcmp.lt.s32.totalorder %v2273_v36, 76800  ;;  %vm3419_vm6 = vcmp.lt.s32.totalorder %v2278_v39, 76800  ;;  %vm3420_vm7 = vcmp.lt.s32.totalorder %v2281_v40, 76800  ;;  %vm3424_vm8 = vcmp.lt.s32.totalorder %v2286_v43, 76800 }
  0xa4   : >> { %3600 = vst [vmem:[#allocation20_spill] sm:$0xff] %v2363_v18  ;;  %vm3425_vm9 = vcmp.lt.s32.totalorder %v2289_v44, 76800  ;;  %vm506_vm14 = vcmp.lt.s32.totalorder %v2342_v13, 76800  ;;  %vm507_vm11 = vcmp.lt.s32.totalorder %v2345_v14, 76800  ;;  %vm508_vm10 = vcmp.lt.s32.totalorder %v2348_v15, 76800  ;;  %v329_v14 = vld [vmem:[%s2421_s28 + $0x78] sm:$0xff] }
  0xa5   : >> { %vm509_vm13 = vcmp.lt.s32.totalorder %v2351_v16, 76800  ;;  %vm510_vm12 = vcmp.lt.s32.totalorder %v2360_v17, 76800  ;;  %vm511_vm15 = vcmp.lt.s32.totalorder %v2363_v18, 76800  ;;  %v2425_v57 = vsel %vm480_vm0, %v281_v11, -100.0  ;;  %v308_v11 = vld [vmem:[%s2357_s19 + $0xd8] sm:$0xff]  ;;  %v330_v18 = vld [vmem:[%s2421_s28 + $0x80] sm:$0xff] }
  0xa6   : >> { %3601 = vst [vmem:[#allocation21_spill] sm:$0xff] %v2425_v57  ;;  %v2429_v58 = vsel %vm481_vm1, %v282_v19, -100.0  ;;  %v2433_v61 = vsel %vm482_vm2, %v283_v20, -100.0  ;;  %v2437_v62 = vsel %vm483_vm3, %v284_v21, -100.0  ;;  %v2445_v4 = vsel %vm484_vm4, %v285_v22, -100.0  ;;  %v312_v22 = vld [vmem:[%s2357_s19 + $0xf8] sm:$0xff] }
  0xa7   : >> { %3602 = vst [vmem:[#allocation22_spill] sm:$0xff] %v2429_v58  ;;  %3603 = vst [vmem:[#allocation23_spill] sm:$0xff] %v2433_v61  ;;  %v2449_v19 = vsel %vm485_vm5, %v286_v23, -100.0  ;;  %v2453_v20 = vsel %vm3419_vm6, %v287_v24, -100.0  ;;  %v2457_v21 = vsel %vm3420_vm7, %v288_v25, -100.0  ;;  %v310_v61 = vld [vmem:[%s2357_s19 + $0xe8] sm:$0xff] }
  0xa8   : >> { %3604 = vst [vmem:[#allocation24_spill] sm:$0xff] %v2437_v62  ;;  %3605 = vst [vmem:[#allocation25_spill] sm:$0xff] %v2445_v4  ;;  %v309_v62 = vld [vmem:[%s2357_s19 + $0xe0] sm:$0xff]  ;;  %v311_v58 = vld [vmem:[%s2357_s19 + $0xf0] sm:$0xff]  ;;  %v2465_v4 = vsel %vm3424_vm8, %v289_v26, -100.0  ;;  %v2469_v23 = vsel %vm3425_vm9, %v290_v27, -100.0 }
  0xa9   : >> { %3606 = vst [vmem:[#allocation26_spill] sm:$0xff] %v2449_v19  ;;  %3607 = vst [vmem:[#allocation27_spill] sm:$0xff] %v2453_v20  ;;  %vm3611_vm6 = vcmp.lt.s32.totalorder %v2294_v47, 76800  ;;  %vm3613_vm7 = vcmp.lt.s32.totalorder %v2297_v48, 76800  ;;  %v315_v20 = vld [vmem:[%s2421_s28 + $0x8] sm:$0xff]  ;;  %v316_v19 = vld [vmem:[%s2421_s28 + $0x10] sm:$0xff] }
  0xaa   : >> { %3608 = vst [vmem:[#allocation28_spill] sm:$0xff] %v2457_v21  ;;  %3609 = vst [vmem:[#allocation29_spill] sm:$0xff] %v2465_v4  ;;  %v2473_v24 = vsel %vm3611_vm6, %v291_v30, -100.0  ;;  %v2477_v25 = vsel %vm3613_vm7, %v292_v31, -100.0  ;;  %v314_v21 = vld [vmem:[%s2421_s28] sm:$0xff]  ;;  %vm3615_vm8 = vcmp.lt.s32.totalorder %v2300_v51, 76800 }
  0xab   : >> { %3610 = vst [vmem:[#allocation30_spill] sm:$0xff] %v2469_v23  ;;  %3612 = vst [vmem:[#allocation31_spill] sm:$0xff] %v2473_v24  ;;  %v2484_v26 = vsel %vm3615_vm8, %v293_v8, -100.0  ;;  %vm3617_vm9 = vcmp.lt.s32.totalorder %v2303_v52, 76800  ;;  %vm3619_vm6 = vcmp.lt.s32.totalorder %v2306_v55, 76800  ;;  %vm3621_vm7 = vcmp.lt.s32.totalorder %v2309_v56, 76800 }
  0xac   : >> { %3614 = vst [vmem:[#allocation32_spill] sm:$0xff] %v2477_v25  ;;  %3616 = vst [vmem:[#allocation33_spill] sm:$0xff] %v2484_v26  ;;  %v2488_v27 = vsel %vm3617_vm9, %v294_v34, -100.0  ;;  %v2492_v30 = vsel %vm3619_vm6, %v295_v37, -100.0  ;;  %v2496_v31 = vsel %vm3621_vm7, %v296_v38, -100.0  ;;  %v317_v25 = vld [vmem:[%s2421_s28 + $0x18] sm:$0xff] }
  0xad   : >> { %3618 = vst [vmem:[#allocation34_spill] sm:$0xff] %v2488_v27  ;;  %3620 = vst [vmem:[#allocation35_spill] sm:$0xff] %v2492_v30  ;;  %v318_v24 = vld [vmem:[%s2421_s28 + $0x20] sm:$0xff]  ;;  %v319_v23 = vld [vmem:[%s2421_s28 + $0x28] sm:$0xff]  ;;  %vm3623_vm8 = vcmp.lt.s32.totalorder %v2312_v59, 76800  ;;  %vm3625_vm9 = vcmp.lt.s32.totalorder %v2315_v60, 76800 }
  0xae   : >> { %3622 = vst [vmem:[#allocation36_spill] sm:$0xff] %v2496_v31  ;;  %v2503_v8 = vsel %vm3623_vm8, %v297_v41, -100.0  ;;  %v2507_v34 = vsel %vm3625_vm9, %v298_v42, -100.0  ;;  %vm3627_vm6 = vcmp.lt.s32.totalorder %v2318_v63, 76800  ;;  %vm3629_vm7 = vcmp.lt.s32.totalorder %v2321_v0, 76800  ;;  %v320_v31 = vld [vmem:[%s2421_s28 + $0x30] sm:$0xff] }
  0xaf   : >> { %3624 = vst [vmem:[#allocation37_spill] sm:$0xff] %v2503_v8  ;;  %3626 = vst [vmem:[#allocation38_spill] sm:$0xff] %v2507_v34  ;;  %v2511_v37 = vsel %vm3627_vm6, %v299_v45, -100.0  ;;  %v2515_v38 = vsel %vm3629_vm7, %v300_v46, -100.0  ;;  %v321_v30 = vld [vmem:[%s2421_s28 + $0x38] sm:$0xff]  ;;  %v322_v27 = vld [vmem:[%s2421_s28 + $0x40] sm:$0xff] }
  0xb0   : >> { %3628 = vst [vmem:[#allocation39_spill] sm:$0xff] %v2511_v37  ;;  %3630 = vst [vmem:[#allocation40_spill] sm:$0xff] %v2515_v38  ;;  %vm3631_vm8 = vcmp.lt.s32.totalorder %v2324_v5, 76800  ;;  %vm3633_vm9 = vcmp.lt.s32.totalorder %v2327_v6, 76800  ;;  %vm3635_vm6 = vcmp.lt.s32.totalorder %v2330_v7, 76800  ;;  %vm3637_vm7 = vcmp.lt.s32.totalorder %v2333_v9, 76800 }
  0xb1   : >> { %v2522_v41 = vsel %vm3631_vm8, %v301_v49, -100.0  ;;  %v2526_v42 = vsel %vm3633_vm9, %v302_v50, -100.0  ;;  %v2530_v45 = vsel %vm3635_vm6, %v303_v53, -100.0  ;;  %v2534_v46 = vsel %vm3637_vm7, %v304_v54, -100.0  ;;  %v323_v38 = vld [vmem:[%s2421_s28 + $0x48] sm:$0xff]  ;;  %v324_v37 = vld [vmem:[%s2421_s28 + $0x50] sm:$0xff] }
  0xb2   : >> { %3632 = vst [vmem:[#allocation41_spill] sm:$0xff] %v2522_v41  ;;  %3634 = vst [vmem:[#allocation42_spill] sm:$0xff] %v2526_v42  ;;  %v325_v34 = vld [vmem:[%s2421_s28 + $0x58] sm:$0xff]  ;;  %vm3639_vm8 = vcmp.lt.s32.totalorder %v2336_v10, 76800  ;;  %vm3641_vm9 = vcmp.lt.s32.totalorder %v2339_v12, 76800  ;;  %v2549_v53 = vsel %vm506_vm14, %v307_v1, -100.0 }
  0xb3   : >> { %3636 = vst [vmem:[#allocation43_spill] sm:$0xff] %v2530_v45  ;;  %3638 = vst [vmem:[#allocation44_spill] sm:$0xff] %v2534_v46  ;;  %v2541_v49 = vsel %vm3639_vm8, %v305_v2, -100.0  ;;  %v2545_v50 = vsel %vm3641_vm9, %v306_v3, -100.0  ;;  %v2553_v54 = vsel %vm507_vm11, %v308_v11, -100.0  ;;  %v326_v46 = vld [vmem:[%s2421_s28 + $0x60] sm:$0xff] }
  0xb4   : >> { %3640 = vst [vmem:[#allocation45_spill] sm:$0xff] %v2541_v49  ;;  %3642 = vst [vmem:[#allocation46_spill] sm:$0xff] %v2545_v50  ;;  %v327_v45 = vld [vmem:[%s2421_s28 + $0x68] sm:$0xff]  ;;  %v2559_v2 = vsel %vm508_vm10, %v309_v62, -100.0  ;;  %v2563_v3 = vsel %vm509_vm13, %v310_v61, -100.0  ;;  %v2567_v13 = vsel %vm510_vm12, %v311_v58, -100.0 }
  0xb5   : >> { %3643 = vst [vmem:[#allocation47_spill] sm:$0xff] %v2549_v53  ;;  %3644 = vst [vmem:[#allocation48_spill] sm:$0xff] %v2553_v54  ;;  %v2571_v1 = vsel %vm511_vm15, %v312_v22, -100.0  ;;  %v328_v11 = vld [vmem:[%s2421_s28 + $0x70] sm:$0xff]  ;;  %v2577_v62 = vsel %vm480_vm0, %v314_v21, 0.0  ;;  %v2581_v16 = vsel %vm481_vm1, %v315_v20, 0.0 }
  0xb6   : >> { %3645 = vst [vmem:[#allocation49_spill] sm:$0xff] %v2559_v2  ;;  %3646 = vst [vmem:[#allocation50_spill] sm:$0xff] %v2563_v3  ;;  %v2585_v61 = vsel %vm482_vm2, %v316_v19, 0.0  ;;  %v576_v58 = vand.u32 2147483647, %v2425_v57  ;;  %v331_v22 = vld [vmem:[%s2421_s28 + $0x88] sm:$0xff] }
  0xb7   : >> { %3647 = vst [vmem:[#allocation51_spill] sm:$0xff] %v2567_v13  ;;  %3648 = vst [vmem:[#allocation52_spill] sm:$0xff] %v2571_v1  ;;  %v2592_v17 = vsel %vm483_vm3, %v317_v25, 0.0  ;;  %v2596_v28 = vsel %vm484_vm4, %v318_v24, 0.0  ;;  %v2600_v29 = vsel %vm485_vm5, %v319_v23, 0.0  ;;  %v3653_v32 = vld [vmem:[#allocation22_spill] sm:$0xff] }
  0xb8   : >> { %3649 = vst [vmem:[#allocation53_spill] sm:$0xff] %v2577_v62  ;;  %3650 = vst [vmem:[#allocation54_spill] sm:$0xff] %v2581_v16  ;;  %v577_v19 = vand.u32 2147483647, %v3653_v32  ;;  %v332_v20 = vld [vmem:[%s2421_s28 + $0x90] sm:$0xff]  ;;  %vm3654_vm0 = vcmp.lt.s32.totalorder %v2278_v39, 76800 }
  0xb9   : >> { %3651 = vst [vmem:[#allocation55_spill] sm:$0xff] %v2585_v61  ;;  %3652 = vst [vmem:[#allocation56_spill] sm:$0xff] %v2600_v29  ;;  %v2606_v21 = vsel %vm3654_vm0, %v320_v31, 0.0  ;;  %vm3656_vm1 = vcmp.lt.s32.totalorder %v2281_v40, 76800  ;;  %vm3658_vm2 = vcmp.lt.s32.totalorder %v2286_v43, 76800  ;;  %v3660_v24 = vld [vmem:[#allocation23_spill] sm:$0xff] }
  0xba   : >> { %3655 = vst [vmem:[#allocation57_spill] sm:$0xff] %v2606_v21  ;;  %v2610_v33 = vsel %vm3656_vm1, %v321_v30, 0.0  ;;  %v2614_v35 = vsel %vm3658_vm2, %v322_v27, 0.0  ;;  %v578_v36 = vand.u32 2147483647, %v3660_v24  ;;  %v333_v23 = vld [vmem:[%s2421_s28 + $0x98] sm:$0xff] }
  0xbb   : >> { %3657 = vst [vmem:[#allocation58_spill] sm:$0xff] %v2610_v33  ;;  %3659 = vst [vmem:[#allocation59_spill] sm:$0xff] %v2614_v35  ;;  %vm3661_vm3 = vcmp.lt.s32.totalorder %v2289_v44, 76800  ;;  %vm3663_vm4 = vcmp.lt.s32.totalorder %v2294_v47, 76800  ;;  %vm3665_vm5 = vcmp.lt.s32.totalorder %v2297_v48, 76800  ;;  %v3667_v30 = vld [vmem:[#allocation24_spill] sm:$0xff] }
  0xbc   : >> { %v2620_v25 = vsel %vm3661_vm3, %v323_v38, 0.0  ;;  %v2624_v39 = vsel %vm3663_vm4, %v324_v37, 0.0  ;;  %v2628_v40 = vsel %vm3665_vm5, %v325_v34, 0.0  ;;  %v579_v43 = vand.u32 2147483647, %v3667_v30  ;;  %v334_v27 = vld [vmem:[%s2421_s28 + $0xa0] sm:$0xff] }
  0xbd   : >> { %3662 = vst [vmem:[#allocation60_spill] sm:$0xff] %v2620_v25  ;;  %3664 = vst [vmem:[#allocation61_spill] sm:$0xff] %v2624_v39  ;;  %vm3668_vm6 = vcmp.lt.s32.totalorder %v2300_v51, 76800  ;;  %vm3670_vm7 = vcmp.lt.s32.totalorder %v2303_v52, 76800  ;;  %v3672_v38 = vld [vmem:[#allocation25_spill] sm:$0xff]  ;;  %v608_v37 = vsub.f32 0.0, %v576_v58 }
  0xbe   : >> { %3666 = vst [vmem:[#allocation62_spill] sm:$0xff] %v2628_v40  ;;  %v2634_v31 = vsel %vm3668_vm6, %v326_v46, 0.0  ;;  %v2638_v44 = vsel %vm3670_vm7, %v327_v45, 0.0  ;;  %v580_v47 = vand.u32 2147483647, %v3672_v38  ;;  %v335_v39 = vld [vmem:[%s2421_s28 + $0xa8] sm:$0xff] }
  0xbf   : >> { %3669 = vst [vmem:[#allocation63_spill] sm:$0xff] %v2634_v31  ;;  %3671 = vst [vmem:[#allocation64_spill] sm:$0xff] %v2638_v44  ;;  %vm3673_vm8 = vcmp.lt.s32.totalorder %v2306_v55, 76800  ;;  %vm3675_vm9 = vcmp.lt.s32.totalorder %v2309_v56, 76800  ;;  %v3677_v40 = vld [vmem:[#allocation26_spill] sm:$0xff]  ;;  %v609_v46 = vsub.f32 0.0, %v577_v19 }
  0xc0   : >> { %v2644_v48 = vsel %vm3673_vm8, %v328_v11, 0.0  ;;  %v2648_v34 = vsel %vm3675_vm9, %v329_v14, 0.0  ;;  %v581_v51 = vand.u32 2147483647, %v3677_v40  ;;  %v336_v31 = vld [vmem:[%s2421_s28 + $0xb0] sm:$0xff]  ;;  %vm3678_vm0 = vcmp.lt.s32.totalorder %v2312_v59, 76800 }
  0xc1   : >> { %3674 = vst [vmem:[#allocation65_spill] sm:$0xff] %v2644_v48  ;;  %3676 = vst [vmem:[#allocation66_spill] sm:$0xff] %v2648_v34  ;;  %v2654_v52 = vsel %vm3678_vm0, %v330_v18, 0.0  ;;  %vm3680_vm1 = vcmp.lt.s32.totalorder %v2315_v60, 76800  ;;  %v3682_v58 = vld [vmem:[#allocation27_spill] sm:$0xff]  ;;  %v610_v11 = vsub.f32 0.0, %v578_v36 }
  0xc2   : >> { %3679 = vst [vmem:[#allocation67_spill] sm:$0xff] %v2654_v52  ;;  %v2658_v45 = vsel %vm3680_vm1, %v331_v22, 0.0  ;;  %v582_v55 = vand.u32 2147483647, %v3682_v58  ;;  %v337_v48 = vld [vmem:[%s2421_s28 + $0xb8] sm:$0xff]  ;;  %vm3683_vm2 = vcmp.lt.s32.totalorder %v2318_v63, 76800 }
  0xc3   : >> { %3681 = vst [vmem:[#allocation68_spill] sm:$0xff] %v2658_v45  ;;  %v2664_v56 = vsel %vm3683_vm2, %v332_v20, 0.0  ;;  %vm3685_vm3 = vcmp.lt.s32.totalorder %v2321_v0, 76800  ;;  %v3687_v19 = vld [vmem:[#allocation28_spill] sm:$0xff]  ;;  %v611_v18 = vsub.f32 0.0, %v579_v43  ;;  %vm3688_vm4 = vcmp.lt.s32.totalorder %v2324_v5, 76800 }
  0xc4   : >> { %3684 = vst [vmem:[#allocation27_spill] sm:$0xff] %v2664_v56  ;;  %v2668_v14 = vsel %vm3685_vm3, %v333_v23, 0.0  ;;  %v583_v59 = vand.u32 2147483647, %v3687_v19  ;;  %v2673_v60 = vsel %vm3688_vm4, %v334_v27, 0.0  ;;  %v612_v45 = vsub.f32 0.0, %v580_v47 }
  0xc5   : >> { %3686 = vst [vmem:[#allocation69_spill] sm:$0xff] %v2668_v14  ;;  %3689 = vst [vmem:[#allocation28_spill] sm:$0xff] %v2673_v60  ;;  %v584_v22 = vand.u32 2147483647, %v2465_v4  ;;  %v640_v36 = vmul.f32 1.442695, %v608_v37 }
  0xc6   : >> { %vm3690_vm5 = vcmp.lt.s32.totalorder %v2327_v6, 76800  ;;  %v3692_v20 = vld [vmem:[#allocation30_spill] sm:$0xff]  ;;  %v613_v0 = vsub.f32 0.0, %v581_v51  ;;  %v642_v23 = vmul.f32 1.442695, %v609_v46  ;;  %vm3693_vm6 = vcmp.lt.s32.totalorder %v2330_v7, 76800 }
  0xc7   : >> { %v2678_v63 = vsel %vm3690_vm5, %v335_v39, 0.0  ;;  %v585_v56 = vand.u32 2147483647, %v3692_v20  ;;  %v2683_v14 = vsel %vm3693_vm6, %v336_v31, 0.0  ;;  %v3695_v43 = vld [vmem:[#allocation31_spill] sm:$0xff]  ;;  %v614_v27 = vsub.f32 0.0, %v582_v55 }
  0xc8   : >> { %3691 = vst [vmem:[#allocation70_spill] sm:$0xff] %v2678_v63  ;;  %3694 = vst [vmem:[#allocation71_spill] sm:$0xff] %v2683_v14  ;;  %v586_v5 = vand.u32 2147483647, %v3695_v43  ;;  %v644_v60 = vmul.f32 1.442695, %v610_v11  ;;  %1527 = vpow2.f32 %v640_v36 }
  0xc9   : >> { %vm3696_vm7 = vcmp.lt.s32.totalorder %v2333_v9, 76800  ;;  %v3698_v37 = vld [vmem:[#allocation32_spill] sm:$0xff]  ;;  %v615_v39 = vsub.f32 0.0, %v583_v59  ;;  %v646_v63 = vmul.f32 1.442695, %v611_v18  ;;  %v616_v51 = vsub.f32 0.0, %v584_v22 }
  0xca   : >> { %v2688_v47 = vsel %vm3696_vm7, %v337_v48, 0.0  ;;  %v587_v6 = vand.u32 2147483647, %v3698_v37  ;;  %v588_v52 = vand.u32 2147483647, %v2484_v26  ;;  %v3699_v7 = vld [vmem:[#allocation34_spill] sm:$0xff]  ;;  %1529 = vpow2.f32 %v642_v23 }
  0xcb   : >> { %3697 = vst [vmem:[#allocation72_spill] sm:$0xff] %v2688_v47  ;;  %v648_v46 = vmul.f32 1.442695, %v612_v45  ;;  %v589_v31 = vand.u32 2147483647, %v3699_v7  ;;  %v617_v14 = vsub.f32 0.0, %v585_v56  ;;  %1531 = vpow2.f32 %v644_v60 }
  0xcc   : >> { %v650_v34 = vmul.f32 1.442695, %v613_v0  ;;  %v3700_v55 = vld [vmem:[#allocation35_spill] sm:$0xff]  ;;  %v618_v44 = vsub.f32 0.0, %v586_v5  ;;  %v652_v9 = vmul.f32 1.442695, %v614_v27  ;;  %1533 = vpow2.f32 %v646_v63 }
  0xcd   : >> { %v590_v11 = vand.u32 2147483647, %v3700_v55  ;;  %v3701_v48 = vld [vmem:[#allocation36_spill] sm:$0xff]  ;;  %v619_v37 = vsub.f32 0.0, %v587_v6  ;;  %v654_v59 = vmul.f32 1.442695, %v615_v39  ;;  %1535 = vpow2.f32 %v648_v46 }
  0xce   : >> { %v591_v47 = vand.u32 2147483647, %v3701_v48  ;;  %v592_v18 = vand.u32 2147483647, %v2503_v8  ;;  %v620_v22 = vsub.f32 0.0, %v588_v52  ;;  %v3702_v36 = vld [vmem:[#allocation38_spill] sm:$0xff]  ;;  %1537 = vpow2.f32 %v650_v34 }
  0xcf   : >> { %v656_v45 = vmul.f32 1.442695, %v616_v51  ;;  %v593_v7 = vand.u32 2147483647, %v3702_v36  ;;  %v621_v56 = vsub.f32 0.0, %v589_v31  ;;  %v3703_v23 = vld [vmem:[#allocation39_spill] sm:$0xff]  ;;  %1539 = vpow2.f32 %v652_v9 }
  0xd0   : >> { %v658_v0 = vmul.f32 1.442695, %v617_v14  ;;  %v594_v55 = vand.u32 2147483647, %v3703_v23  ;;  %v622_v5 = vsub.f32 0.0, %v590_v11  ;;  %v3704_v27 = vld [vmem:[#allocation40_spill] sm:$0xff]  ;;  %1541 = vpow2.f32 %v654_v59 }
  0xd1   : >> { %v660_v60 = vmul.f32 1.442695, %v618_v44  ;;  %v595_v48 = vand.u32 2147483647, %v3704_v27  ;;  %v623_v6 = vsub.f32 0.0, %v591_v47  ;;  %v624_v52 = vsub.f32 0.0, %v592_v18 }
  0xd2   : >> { %v662_v63 = vmul.f32 1.442695, %v619_v37  ;;  %v596_v39 = vand.u32 2147483647, %v2522_v41  ;;  %1543 = vpow2.f32 %v656_v45  ;;  %v664_v51 = vmul.f32 1.442695, %v620_v22  ;;  %v2701_v14 = vpop.eup %1527 }
  0xd3   : >> { %v597_v46 = vand.u32 2147483647, %v2526_v42  ;;  %v625_v31 = vsub.f32 0.0, %v593_v7  ;;  %1545 = vpow2.f32 %v658_v0  ;;  %v666_v34 = vmul.f32 1.442695, %v621_v56  ;;  %3705 = vst [vmem:[#allocation73_spill] sm:$0xff] %v2701_v14 }
  0xd4   : >> { %v3706_v11 = vld [vmem:[#allocation43_spill] sm:$0xff]  ;;  %v626_v44 = vsub.f32 0.0, %v594_v55  ;;  %1547 = vpow2.f32 %v660_v60  ;;  %v668_v27 = vmul.f32 1.442695, %v622_v5  ;;  %v2704_v47 = vpop.eup %1529  ;;  %v3708_v37 = vld [vmem:[#allocation44_spill] sm:$0xff]  ;;  %v627_v18 = vsub.f32 0.0, %v595_v48 }
  0xd5   : >> { %v598_v9 = vand.u32 2147483647, %v3706_v11  ;;  %3707 = vst [vmem:[#allocation74_spill] sm:$0xff] %v2704_v47  ;;  %v599_v59 = vand.u32 2147483647, %v3708_v37  ;;  %1549 = vpow2.f32 %v662_v63  ;;  %v2707_v45 = vpop.eup %1531  ;;  %v628_v56 = vsub.f32 0.0, %v596_v39 }
  0xd6   : >> { %v670_v22 = vmul.f32 1.442695, %v623_v6  ;;  %3709 = vst [vmem:[#allocation75_spill] sm:$0xff] %v2707_v45  ;;  %v600_v7 = vand.u32 2147483647, %v2541_v49  ;;  %1551 = vpow2.f32 %v664_v51  ;;  %v2710_v11 = vpop.eup %1533  ;;  %v629_v5 = vsub.f32 0.0, %v597_v46 }
  0xd7   : >> { %v672_v0 = vmul.f32 1.442695, %v624_v52  ;;  %3710 = vst [vmem:[#allocation76_spill] sm:$0xff] %v2710_v11  ;;  %v601_v55 = vand.u32 2147483647, %v2545_v50  ;;  %1553 = vpow2.f32 %v666_v34  ;;  %v2713_v37 = vpop.eup %1535  ;;  %v338_v48 = vld [vmem:[%s2421_s28 + $0xc0] sm:$0xff]  ;;  %v2803_v36 = vmul.f32 %v2600_v29, %v3677_v40 }
  0xd8   : >> { %v674_v60 = vmul.f32 1.442695, %v625_v31  ;;  %3711 = vst [vmem:[#allocation77_spill] sm:$0xff] %v2713_v37  ;;  %v602_v6 = vand.u32 2147483647, %v2549_v53  ;;  %v630_v63 = vsub.f32 0.0, %v598_v9  ;;  %1555 = vpow2.f32 %v668_v27  ;;  %v2717_v39 = vpop.eup %1537 }
  0xd9   : >> { %v676_v49 = vmul.f32 1.442695, %v626_v44  ;;  %3712 = vst [vmem:[#allocation78_spill] sm:$0xff] %v2717_v39  ;;  %v339_v52 = vld [vmem:[%s2421_s28 + $0xc8] sm:$0xff]  ;;  %v603_v51 = vand.u32 2147483647, %v2553_v54  ;;  %1557 = vpow2.f32 %v670_v22  ;;  %v2721_v31 = vpop.eup %1539 }
  0xda   : >> { %v631_v42 = vsub.f32 0.0, %v599_v59  ;;  %v678_v46 = vmul.f32 1.442695, %v627_v18  ;;  %3713 = vst [vmem:[#allocation79_spill] sm:$0xff] %v2721_v31  ;;  %v340_v34 = vld [vmem:[%s2421_s28 + $0xd0] sm:$0xff]  ;;  %v632_v53 = vsub.f32 0.0, %v600_v7  ;;  %1559 = vpow2.f32 %v672_v0  ;;  %v2725_v27 = vpop.eup %1541 }
  0xdb   : >> { %v604_v50 = vand.u32 2147483647, %v2559_v2  ;;  %v680_v9 = vmul.f32 1.442695, %v628_v56  ;;  %3714 = vst [vmem:[#allocation80_spill] sm:$0xff] %v2725_v27  ;;  %v341_v44 = vld [vmem:[%s2421_s28 + $0xd8] sm:$0xff]  ;;  %1561 = vpow2.f32 %v674_v60 }
  0xdc   : >> { %vm3715_vm8 = vcmp.lt.s32.totalorder %v2336_v10, 76800  ;;  %v633_v59 = vsub.f32 0.0, %v601_v55  ;;  %v682_v22 = vmul.f32 1.442695, %v629_v5  ;;  %v2732_v54 = vpop.eup %1543  ;;  %v342_v18 = vld [vmem:[%s2421_s28 + $0xe0] sm:$0xff]  ;;  %v343_v23 = vld [vmem:[%s2421_s28 + $0xe8] sm:$0xff]  ;;  %1563 = vpow2.f32 %v676_v49 }
  0xdd   : >> { %v2730_v41 = vsel %vm3715_vm8, %v338_v48, 0.0  ;;  %3717 = vst [vmem:[#allocation82_spill] sm:$0xff] %v2732_v54  ;;  %vm3718_vm9 = vcmp.lt.s32.totalorder %v2339_v12, 76800  ;;  %v634_v7 = vsub.f32 0.0, %v602_v6  ;;  %v684_v56 = vmul.f32 1.442695, %v630_v63  ;;  %v2740_v0 = vpop.eup %1545 }
  0xde   : >> { %3716 = vst [vmem:[#allocation81_spill] sm:$0xff] %v2730_v41  ;;  %v2738_v2 = vsel %vm3718_vm9, %v339_v52, 0.0  ;;  %3720 = vst [vmem:[#allocation84_spill] sm:$0xff] %v2740_v0  ;;  %v2744_v10 = vsel %vm506_vm14, %v340_v34, 0.0  ;;  %v635_v55 = vsub.f32 0.0, %v603_v51  ;;  %1565 = vpow2.f32 %v678_v46  ;;  %v2746_v60 = vpop.eup %1547 }
  0xdf   : >> { %3719 = vst [vmem:[#allocation83_spill] sm:$0xff] %v2738_v2  ;;  %3722 = vst [vmem:[#allocation16_spill] sm:$0xff] %v2744_v10  ;;  %v686_v5 = vmul.f32 1.442695, %v631_v42  ;;  %v2750_v41 = vsel %vm507_vm11, %v341_v44, 0.0  ;;  %v636_v12 = vsub.f32 0.0, %v604_v50  ;;  %1567 = vpow2.f32 %v680_v9  ;;  %v2752_v49 = vpop.eup %1549 }
  0xe0   : >> { %3723 = vst [vmem:[#allocation85_spill] sm:$0xff] %v2746_v60  ;;  %3725 = vst [vmem:[#allocation17_spill] sm:$0xff] %v2750_v41  ;;  %v688_v6 = vmul.f32 1.442695, %v632_v53  ;;  %v2756_v63 = vsel %vm508_vm10, %v342_v18, 0.0  ;;  %v2760_v52 = vsel %vm509_vm13, %v343_v23, 0.0  ;;  %1569 = vpow2.f32 %v682_v22  ;;  %v2762_v51 = vpop.eup %1551 }
  0xe1   : >> { %3726 = vst [vmem:[#allocation86_spill] sm:$0xff] %v2752_v49  ;;  %3727 = vst [vmem:[#allocation87_spill] sm:$0xff] %v2756_v63  ;;  %v690_v42 = vmul.f32 1.442695, %v633_v59  ;;  %v605_v46 = vand.u32 2147483647, %v2563_v3  ;;  %1571 = vpow2.f32 %v684_v56  ;;  %v2767_v53 = vmul.f32 %v2577_v62, %v2425_v57  ;;  %v2769_v34 = vpop.eup %1553 }
  0xe2   : >> { %3729 = vst [vmem:[#allocation18_spill] sm:$0xff] %v2760_v52  ;;  %3730 = vst [vmem:[#allocation88_spill] sm:$0xff] %v2762_v51  ;;  %v692_v50 = vmul.f32 1.442695, %v634_v7  ;;  %v606_v15 = vand.u32 2147483647, %v2567_v13  ;;  %1573 = vpow2.f32 %v686_v5  ;;  %v2773_v44 = vpop.eup %1555  ;;  %v2777_v22 = vmul.f32 %v2581_v16, %v3653_v32 }
  0xe3   : >> { %3731 = vst [vmem:[#allocation89_spill] sm:$0xff] %v2769_v34  ;;  %v607_v9 = vand.u32 2147483647, %v2571_v1  ;;  %v694_v23 = vmul.f32 1.442695, %v635_v55  ;;  %3732 = vst [vmem:[#allocation90_spill] sm:$0xff] %v2773_v44  ;;  %1575 = vpow2.f32 %v688_v6  ;;  %v2781_v18 = vmul.f32 %v2585_v61, %v3660_v24  ;;  %v2783_v7 = vpop.eup %1557 }
  0xe4   : >> { %v696_v59 = vmul.f32 1.442695, %v636_v12  ;;  %3733 = vst [vmem:[#allocation91_spill] sm:$0xff] %v2783_v7  ;;  %1577 = vpow2.f32 %v690_v42  ;;  %v2786_v56 = vadd.f32 1.0, %v2701_v14  ;;  %v2790_v55 = vmul.f32 %v2592_v17, %v3667_v30  ;;  %v2796_v48 = vpop.eup %1559  ;;  %v3745_v63 = vld [vmem:[#allocation61_spill] sm:$0xff] }
  0xe5   : >> { %v2794_v5 = vmul.f32 %v2596_v28, %v3672_v38  ;;  %3735 = vst [vmem:[#allocation93_spill] sm:$0xff] %v2796_v48  ;;  %v637_v12 = vsub.f32 0.0, %v605_v46  ;;  %1579 = vpow2.f32 %v692_v50  ;;  %v2799_v6 = vadd.f32 1.0, %v2704_v47  ;;  %v2805_v42 = vpop.eup %1561 }
  0xe6   : >> { %3734 = vst [vmem:[#allocation92_spill] sm:$0xff] %v2786_v56  ;;  %3737 = vst [vmem:[#allocation95_spill] sm:$0xff] %v2805_v42  ;;  %v638_v14 = vsub.f32 0.0, %v606_v15  ;;  %v639_v1 = vsub.f32 0.0, %v607_v9  ;;  %1581 = vpow2.f32 %v694_v23  ;;  %v2808_v13 = vadd.f32 1.0, %v2707_v45  ;;  %v2810_v52 = vpop.eup %1563 }
  0xe7   : >> { %3736 = vst [vmem:[#allocation94_spill] sm:$0xff] %v2799_v6  ;;  %3739 = vst [vmem:[#allocation97_spill] sm:$0xff] %v2810_v52  ;;  %1583 = vpow2.f32 %v696_v59  ;;  %v2813_v46 = vadd.f32 1.0, %v2710_v11  ;;  %v2817_v50 = vmul.f32 %v2606_v21, %v3682_v58  ;;  %v2821_v47 = vmul.f32 %v2610_v33, %v3687_v19 }
  0xe8   : >> { %3738 = vst [vmem:[#allocation96_spill] sm:$0xff] %v2808_v13  ;;  %v2823_v15 = vpop.eup %1565  ;;  %v2826_v9 = vadd.f32 1.0, %v2713_v37  ;;  %v2830_v23 = vmul.f32 %v2614_v35, %v2465_v4  ;;  %v2834_v59 = vmul.f32 %v2620_v25, %v3692_v20  ;;  %1585 = vlog2.f32 %v2786_v56 }
  0xe9   : >> { %3740 = vst [vmem:[#allocation98_spill] sm:$0xff] %v2813_v46  ;;  %3741 = vst [vmem:[#allocation99_spill] sm:$0xff] %v2823_v15  ;;  %v2837_v11 = vpop.eup %1567  ;;  %v698_v45 = vmul.f32 1.442695, %v637_v12  ;;  %v2840_v3 = vadd.f32 1.0, %v2717_v39  ;;  %v2844_v37 = vmul.f32 %v3745_v63, %v3695_v43  ;;  %1587 = vlog2.f32 %v2799_v6 }
  0xea   : >> { %3742 = vst [vmem:[#allocation100_spill] sm:$0xff] %v2826_v9  ;;  %3743 = vst [vmem:[#allocation101_spill] sm:$0xff] %v2837_v11  ;;  %v2847_v41 = vpop.eup %1569  ;;  %v700_v10 = vmul.f32 1.442695, %v638_v14  ;;  %v702_v2 = vmul.f32 1.442695, %v639_v1  ;;  %1589 = vlog2.f32 %v2808_v13 }
  0xeb   : >> { %3744 = vst [vmem:[#allocation102_spill] sm:$0xff] %v2840_v3  ;;  %3746 = vst [vmem:[#allocation103_spill] sm:$0xff] %v2847_v41  ;;  %v2850_v25 = vadd.f32 1.0, %v2721_v31  ;;  %v2853_v56 = vpop.eup %1571  ;;  %v2856_v12 = vadd.f32 1.0, %v2725_v27  ;;  %v736_v39 = vmax.f32 %v2425_v57, 0.0  ;;  %v737_v63 = vmax.f32 %v3653_v32, 0.0 }
  0xec   : >> { %3748 = vst [vmem:[#allocation105_spill] sm:$0xff] %v2853_v56  ;;  %1591 = vlog2.f32 %v2813_v46  ;;  %v2861_v6 = vpop.eup %1573  ;;  %v738_v1 = vmax.f32 %v3660_v24, 0.0  ;;  %v739_v14 = vmax.f32 %v3667_v30, 0.0  ;;  %v740_v31 = vmax.f32 %v3672_v38, 0.0  ;;  %v3755_v32 = vld [vmem:[#allocation32_spill] sm:$0xff]  ;;  %v3757_v24 = vld [vmem:[#allocation34_spill] sm:$0xff] }
  0xed   : >> { %3747 = vst [vmem:[#allocation104_spill] sm:$0xff] %v2850_v25  ;;  %3749 = vst [vmem:[#allocation106_spill] sm:$0xff] %v2856_v12  ;;  %1593 = vlog2.f32 %v2826_v9  ;;  %v2867_v13 = vpop.eup %1575  ;;  %v2870_v27 = vadd.f32 1.0, %v2732_v54  ;;  %v741_v57 = vmax.f32 %v3677_v40, 0.0  ;;  %v2884_v54 = vadd.f32 1.0, %v2740_v0 }
  0xee   : >> { %3750 = vst [vmem:[#allocation107_spill] sm:$0xff] %v2861_v6  ;;  %3751 = vst [vmem:[#allocation108_spill] sm:$0xff] %v2867_v13  ;;  %1595 = vlog2.f32 %v2840_v3  ;;  %v2875_v46 = vpop.eup %1577  ;;  %v2897_v0 = vadd.f32 1.0, %v2746_v60  ;;  %v800_v13 = vsub.f32 %v736_v39, %v2767_v53  ;;  %v801_v30 = vsub.f32 %v737_v63, %v2777_v22 }
  0xef   : >> { %3752 = vst [vmem:[#allocation109_spill] sm:$0xff] %v2875_v46  ;;  %1597 = vlog2.f32 %v2850_v25  ;;  %v2881_v9 = vpop.eup %1579  ;;  %3754 = vst [vmem:[#allocation111_spill] sm:$0xff] %v2884_v54  ;;  %v3758_v46 = vld [vmem:[#allocation35_spill] sm:$0xff]  ;;  %v1184_v25 = vadd.f32 %v2581_v16, %v2577_v62  ;;  %v802_v60 = vsub.f32 %v738_v1, %v2781_v18  ;;  %v2914_v22 = vadd.f32 1.0, %v2762_v51 }
  0xf0   : >> { %3753 = vst [vmem:[#allocation110_spill] sm:$0xff] %v2881_v9  ;;  %1599 = vlog2.f32 %v2856_v12  ;;  %v2889_v3 = vpop.eup %1581  ;;  %v3760_v9 = vld [vmem:[#allocation36_spill] sm:$0xff]  ;;  %v804_v18 = vsub.f32 %v740_v31, %v2794_v5  ;;  %v2925_v31 = vadd.f32 1.0, %v2773_v44  ;;  %v3767_v5 = vmax.f32 %v3687_v19, 0.0 }
  0xf1   : >> { %3756 = vst [vmem:[#allocation112_spill] sm:$0xff] %v2889_v3  ;;  %1601 = vpow2.f32 %v698_v45  ;;  %v2894_v6 = vpop.eup %1583  ;;  %v1185_v45 = vadd.f32 %v1184_v25, %v2585_v61  ;;  %vm966_vm0 = vcmp.ge.f32.partialorder %v3682_v58, 0.0  ;;  %vm967_vm1 = vcmp.ge.f32.partialorder %v3687_v19, 0.0 }
  0xf2   : >> { %3759 = vst [vmem:[#allocation113_spill] sm:$0xff] %v2894_v6  ;;  %1603 = vlog2.f32 %v2870_v27  ;;  %v1586_v12 = vpop.eup %1585  ;;  %v2907_v6 = vadd.f32 1.0, %v2752_v49  ;;  %v807_v44 = vsub.f32 %v3767_v5, %v2821_v47  ;;  %v3772_v5 = vld [vmem:[#allocation42_spill] sm:$0xff] }
  0xf3   : >> { %1605 = vpow2.f32 %v700_v10  ;;  %v1588_v38 = vpop.eup %1587  ;;  %v833_v40 = vmul.f32 0.6931472, %v1586_v12  ;;  %v803_v10 = vsub.f32 %v739_v14, %v2790_v55 }
  0xf4   : >> { %1607 = vlog2.f32 %v2884_v54  ;;  %v1590_v39 = vpop.eup %1589  ;;  %v835_v53 = vmul.f32 0.6931472, %v1588_v38  ;;  %v2920_v38 = vadd.f32 1.0, %v2769_v34 }
  0xf5   : >> { %1609 = vpow2.f32 %v702_v2  ;;  %v837_v16 = vmul.f32 0.6931472, %v1590_v39  ;;  %v896_v49 = vadd.f32 %v833_v40, %v800_v13  ;;  %v1186_v2 = vadd.f32 %v1185_v45, %v2592_v17 }
  0xf6   : >> { %v1592_v63 = vpop.eup %1591  ;;  %1611 = vlog2.f32 %v2897_v0  ;;  %v897_v1 = vadd.f32 %v835_v53, %v801_v30  ;;  %v805_v39 = vsub.f32 %v741_v57, %v2803_v36  ;;  %v3761_v30 = vld [vmem:[#allocation38_spill] sm:$0xff]  ;;  %v3764_v53 = vld [vmem:[#allocation39_spill] sm:$0xff] }
  0xf7   : >> { %v1594_v62 = vpop.eup %1593  ;;  %v839_v12 = vmul.f32 0.6931472, %v1592_v63  ;;  %1613 = vlog2.f32 %v2907_v6  ;;  %v898_v55 = vadd.f32 %v837_v16, %v802_v60  ;;  %v1187_v45 = vadd.f32 %v1186_v2, %v2596_v28 }
  0xf8   : >> { %v1596_v54 = vpop.eup %1595  ;;  %v841_v25 = vmul.f32 0.6931472, %v1594_v62  ;;  %v1056_v40 = vadd.f32 %v897_v1, %v896_v49  ;;  %1615 = vlog2.f32 %v2914_v22  ;;  %v3763_v16 = vmax.f32 %v3682_v58, 0.0 }
  0xf9   : >> { %v1598_v14 = vpop.eup %1597  ;;  %v843_v51 = vmul.f32 0.6931472, %v1596_v54  ;;  %v899_v13 = vadd.f32 %v839_v12, %v803_v10  ;;  %v2936_v10 = vadd.f32 1.0, %v2783_v7  ;;  %v3765_v12 = vld [vmem:[#allocation40_spill] sm:$0xff]  ;;  %1617 = vlog2.f32 %v2920_v38 }
  0xfa   : >> { %v1600_v61 = vpop.eup %1599  ;;  %v806_v60 = vsub.f32 %v3763_v16, %v2817_v50  ;;  %v845_v57 = vmul.f32 0.6931472, %v1598_v14  ;;  %v900_v54 = vadd.f32 %v841_v25, %v804_v18  ;;  %v1057_v36 = vadd.f32 %v1056_v40, %v898_v55  ;;  %v3769_v40 = vld [vmem:[#allocation41_spill] sm:$0xff]  ;;  %v3773_v16 = vld [vmem:[#allocation62_spill] sm:$0xff] }
  0xfb   : >> { %v2930_v62 = vpop.eup %1601  ;;  %v847_v50 = vmul.f32 0.6931472, %v1600_v61  ;;  %v901_v14 = vadd.f32 %v843_v51, %v805_v39  ;;  %v2947_v55 = vadd.f32 1.0, %v2796_v48  ;;  %1619 = vlog2.f32 %v2925_v31 }
  0xfc   : >> { %3762 = vst [vmem:[#allocation114_spill] sm:$0xff] %v2930_v62  ;;  %v1604_v49 = vpop.eup %1603  ;;  %v1058_v18 = vadd.f32 %v1057_v36, %v899_v13  ;;  %v1188_v1 = vadd.f32 %v1187_v45, %v2600_v29  ;;  %v3771_v7 = vmax.f32 %v2465_v4, 0.0  ;;  %v902_v61 = vadd.f32 %v845_v57, %v806_v60 }
  0xfd   : >> { %v2941_v2 = vpop.eup %1605  ;;  %3768 = vst [vmem:[#allocation116_spill] sm:$0xff] %v2947_v55  ;;  %v849_v47 = vmul.f32 0.6931472, %v1604_v49  ;;  %v2958_v13 = vadd.f32 1.0, %v2805_v42  ;;  %v779_v48 = vmul.f32 %v3773_v16, %v3755_v32  ;;  %1621 = vlog2.f32 %v2936_v10 }
  0xfe   : >> { %3766 = vst [vmem:[#allocation115_spill] sm:$0xff] %v2941_v2  ;;  %v1608_v25 = vpop.eup %1607  ;;  %v808_v34 = vsub.f32 %v3771_v7, %v2830_v23  ;;  %v1059_v51 = vadd.f32 %v1058_v18, %v900_v54  ;;  %v3774_v45 = vmax.f32 %v3692_v20, 0.0  ;;  %v903_v7 = vadd.f32 %v847_v50, %v807_v44  ;;  %v3776_v54 = vld [vmem:[#allocation63_spill] sm:$0xff] }
  0xff   : >> { %v2952_v63 = vpop.eup %1609  ;;  %v851_v4 = vmul.f32 0.6931472, %v1608_v25  ;;  %v2968_v57 = vadd.f32 1.0, %v2810_v52  ;;  %v780_v49 = vmul.f32 %v3776_v54, %v2484_v26  ;;  %1623 = vlog2.f32 %v2947_v55 }
 0x100   : >> { %3770 = vst [vmem:[#allocation117_spill] sm:$0xff] %v2952_v63  ;;  %v1612_v39 = vpop.eup %1611  ;;  %v809_v29 = vsub.f32 %v3774_v45, %v2834_v59  ;;  %v1060_v23 = vadd.f32 %v1059_v51, %v901_v14  ;;  %v1189_v18 = vadd.f32 %v1188_v1, %v2606_v21  ;;  %v3777_v36 = vmax.f32 %v3695_v43, 0.0  ;;  %v3779_v14 = vld [vmem:[#allocation43_spill] sm:$0xff]  ;;  %v3780_v45 = vld [vmem:[#allocation64_spill] sm:$0xff] }
 0x101   : >> { %v1614_v60 = vpop.eup %1613  ;;  %3775 = vst [vmem:[#allocation62_spill] sm:$0xff] %v2968_v57  ;;  %v853_v20 = vmul.f32 0.6931472, %v1612_v39  ;;  %v904_v59 = vadd.f32 %v849_v47, %v808_v34  ;;  %v2978_v50 = vadd.f32 1.0, %v2823_v15  ;;  %v781_v52 = vmul.f32 %v3780_v45, %v3757_v24  ;;  %v3783_v47 = vld [vmem:[#allocation65_spill] sm:$0xff] }
 0x102   : >> { %v810_v42 = vsub.f32 %v3777_v36, %v2844_v37  ;;  %v1061_v25 = vadd.f32 %v1060_v23, %v902_v61  ;;  %v1616_v44 = vpop.eup %1615  ;;  %1625 = vlog2.f32 %v2958_v13  ;;  %v3781_v1 = vmax.f32 %v3755_v32, 0.0 }
 0x103   : >> { %3778 = vst [vmem:[#allocation63_spill] sm:$0xff] %v2978_v50  ;;  %v855_v55 = vmul.f32 0.6931472, %v1614_v60  ;;  %v905_v43 = vadd.f32 %v851_v4, %v809_v29  ;;  %v1618_v39 = vpop.eup %1617  ;;  %v2987_v34 = vadd.f32 1.0, %v2837_v11  ;;  %v782_v61 = vmul.f32 %v3783_v47, %v3758_v46  ;;  %v3786_v29 = vld [vmem:[#allocation44_spill] sm:$0xff] }
 0x104   : >> { %v811_v21 = vsub.f32 %v3781_v1, %v779_v48  ;;  %v1062_v37 = vadd.f32 %v1061_v25, %v903_v7  ;;  %1627 = vlog2.f32 %v2968_v57  ;;  %v1190_v36 = vadd.f32 %v1189_v18, %v2610_v33  ;;  %v3787_v25 = vld [vmem:[#allocation66_spill] sm:$0xff] }
 0x105   : >> { %3782 = vst [vmem:[#allocation118_spill] sm:$0xff] %v2987_v34  ;;  %v3784_v23 = vmax.f32 %v2484_v26, 0.0  ;;  %v857_v15 = vmul.f32 0.6931472, %v1616_v44  ;;  %v906_v32 = vadd.f32 %v853_v20, %v810_v42  ;;  %v1620_v60 = vpop.eup %1619  ;;  %v2996_v4 = vadd.f32 1.0, %v2847_v41  ;;  %v3790_v42 = vld [vmem:[#allocation67_spill] sm:$0xff] }
 0x106   : >> { %v1063_v48 = vadd.f32 %v1062_v37, %v904_v59  ;;  %v783_v1 = vmul.f32 %v3787_v25, %v3760_v9  ;;  %1629 = vlog2.f32 %v2978_v50  ;;  %v3788_v11 = vmax.f32 %v3757_v24, 0.0 }
 0x107   : >> { %v812_v51 = vsub.f32 %v3784_v23, %v780_v49  ;;  %3785 = vst [vmem:[#allocation119_spill] sm:$0xff] %v2996_v4  ;;  %v859_v57 = vmul.f32 0.6931472, %v1618_v39  ;;  %v907_v26 = vadd.f32 %v855_v55, %v811_v21  ;;  %v1622_v44 = vpop.eup %1621  ;;  %v3005_v20 = vadd.f32 1.0, %v2853_v56  ;;  %v3792_v21 = vld [vmem:[#allocation107_spill] sm:$0xff]  ;;  %v3794_v55 = vld [vmem:[#allocation45_spill] sm:$0xff] }
 0x108   : >> { %v813_v18 = vsub.f32 %v3788_v11, %v781_v52  ;;  %v1064_v49 = vadd.f32 %v1063_v48, %v905_v43  ;;  %v784_v59 = vmul.f32 %v3790_v42, %v2503_v8  ;;  %1631 = vlog2.f32 %v2987_v34  ;;  %v3795_v48 = vld [vmem:[#allocation68_spill] sm:$0xff] }
 0x109   : >> { %3789 = vst [vmem:[#allocation120_spill] sm:$0xff] %v3005_v20  ;;  %v1191_v37 = vadd.f32 %v1190_v36, %v2614_v35  ;;  %v3791_v23 = vmax.f32 %v3758_v46, 0.0  ;;  %v861_v41 = vmul.f32 0.6931472, %v1620_v60  ;;  %v908_v24 = vadd.f32 %v857_v15, %v812_v51  ;;  %v1624_v52 = vpop.eup %1623  ;;  %v3797_v15 = vld [vmem:[#allocation108_spill] sm:$0xff]  ;;  %v3799_v51 = vld [vmem:[#allocation27_spill] sm:$0xff] }
 0x10a   : >> { %v1065_v11 = vadd.f32 %v1064_v49, %v906_v32  ;;  %v3014_v43 = vadd.f32 1.0, %v3792_v21  ;;  %v785_v56 = vmul.f32 %v3795_v48, %v3761_v30  ;;  %1633 = vlog2.f32 %v2996_v4 }
 0x10b   : >> { %v814_v7 = vsub.f32 %v3791_v23, %v782_v61  ;;  %v3796_v34 = vmax.f32 %v3760_v9, 0.0  ;;  %v863_v50 = vmul.f32 0.6931472, %v1622_v44  ;;  %v909_v46 = vadd.f32 %v859_v57, %v813_v18  ;;  %v3800_v23 = vld [vmem:[#allocation60_spill] sm:$0xff]  ;;  %v3802_v57 = vld [vmem:[#allocation109_spill] sm:$0xff]  ;;  %v3804_v18 = vld [vmem:[#allocation46_spill] sm:$0xff] }
 0x10c   : >> { %3793 = vst [vmem:[#allocation67_spill] sm:$0xff] %v3014_v43  ;;  %v1066_v61 = vadd.f32 %v1065_v11, %v907_v26  ;;  %v1626_v60 = vpop.eup %1625  ;;  %v3023_v32 = vadd.f32 1.0, %v3797_v15  ;;  %v786_v49 = vmul.f32 %v3799_v51, %v3764_v53  ;;  %1635 = vlog2.f32 %v3005_v20  ;;  %v3805_v11 = vld [vmem:[#allocation69_spill] sm:$0xff] }
 0x10d   : >> { %v815_v36 = vsub.f32 %v3796_v34, %v783_v1  ;;  %v1192_v39 = vadd.f32 %v1191_v37, %v3800_v23  ;;  %v3801_v21 = vmax.f32 %v2503_v8, 0.0  ;;  %v865_v35 = vmul.f32 0.6931472, %v1624_v52 }
 0x10e   : >> { %3798 = vst [vmem:[#allocation68_spill] sm:$0xff] %v3023_v32  ;;  %v910_v9 = vadd.f32 %v861_v41, %v814_v7  ;;  %v1067_v34 = vadd.f32 %v1066_v61, %v908_v24  ;;  %v1628_v1 = vpop.eup %1627  ;;  %v3032_v26 = vadd.f32 1.0, %v3802_v57  ;;  %v787_v15 = vmul.f32 %v3805_v11, %v3765_v12  ;;  %v3807_v41 = vld [vmem:[#allocation110_spill] sm:$0xff]  ;;  %v3809_v7 = vld [vmem:[#allocation28_spill] sm:$0xff]  ;;  %v3810_v61 = vld [vmem:[#allocation61_spill] sm:$0xff] }
 0x10f   : >> { %v816_v4 = vsub.f32 %v3801_v21, %v784_v59  ;;  %1637 = vlog2.f32 %v3014_v43  ;;  %v3806_v20 = vmax.f32 %v3761_v30, 0.0  ;;  %v867_v23 = vmul.f32 0.6931472, %v1626_v60  ;;  %v3814_v60 = vld [vmem:[#allocation71_spill] sm:$0xff] }
 0x110   : >> { %3803 = vst [vmem:[#allocation27_spill] sm:$0xff] %v3032_v26  ;;  %v911_v8 = vadd.f32 %v863_v50, %v815_v36  ;;  %v1068_v59 = vadd.f32 %v1067_v34, %v909_v46  ;;  %v1630_v52 = vpop.eup %1629  ;;  %v3041_v24 = vadd.f32 1.0, %v3807_v41  ;;  %v788_v21 = vmul.f32 %v3809_v7, %v3769_v40  ;;  %v3813_v50 = vld [vmem:[#allocation70_spill] sm:$0xff] }
 0x111   : >> { %v817_v37 = vsub.f32 %v3806_v20, %v785_v56  ;;  %1639 = vlog2.f32 %v3023_v32  ;;  %v1193_v44 = vadd.f32 %v1192_v39, %v3810_v61  ;;  %v3811_v57 = vmax.f32 %v3764_v53, 0.0 }
 0x112   : >> { %3808 = vst [vmem:[#allocation69_spill] sm:$0xff] %v3041_v24  ;;  %v869_v33 = vmul.f32 0.6931472, %v1628_v1  ;;  %v912_v30 = vadd.f32 %v865_v35, %v816_v4  ;;  %v1069_v56 = vadd.f32 %v1068_v59, %v910_v9  ;;  %v1632_v20 = vpop.eup %1631  ;;  %v3050_v46 = vadd.f32 1.0, %v2889_v3  ;;  %v3816_v9 = vld [vmem:[#allocation113_spill] sm:$0xff] }
 0x113   : >> { %v818_v43 = vsub.f32 %v3811_v57, %v786_v49  ;;  %v789_v36 = vmul.f32 %v3813_v50, %v3772_v5  ;;  %v790_v34 = vmul.f32 %v3814_v60, %v3779_v14  ;;  %1641 = vlog2.f32 %v3032_v26 }
 0x114   : >> { %3812 = vst [vmem:[#allocation28_spill] sm:$0xff] %v3050_v46  ;;  %v3815_v39 = vmax.f32 %v3765_v12, 0.0  ;;  %v871_v53 = vmul.f32 0.6931472, %v1630_v52  ;;  %v913_v49 = vadd.f32 %v867_v23, %v817_v37  ;;  %v1070_v1 = vadd.f32 %v1069_v56, %v911_v8  ;;  %v1634_v35 = vpop.eup %1633  ;;  %v3821_v23 = vld [vmem:[#allocation72_spill] sm:$0xff]  ;;  %v3822_v56 = vld [vmem:[#allocation81_spill] sm:$0xff] }
 0x115   : >> { %v3060_v4 = vadd.f32 1.0, %v3816_v9  ;;  %v3063_v57 = vadd.f32 1.0, %v2930_v62  ;;  %1643 = vlog2.f32 %v3041_v24  ;;  %v1194_v59 = vadd.f32 %v1193_v44, %v3773_v16 }
 0x116   : >> { %v819_v41 = vsub.f32 %v3815_v39, %v787_v15  ;;  %v3819_v3 = vmax.f32 %v3769_v40, 0.0  ;;  %v873_v32 = vmul.f32 0.6931472, %v1632_v20  ;;  %v914_v12 = vadd.f32 %v869_v33, %v818_v43  ;;  %v1636_v52 = vpop.eup %1635 }
 0x117   : >> { %3817 = vst [vmem:[#allocation61_spill] sm:$0xff] %v3060_v4  ;;  %3818 = vst [vmem:[#allocation70_spill] sm:$0xff] %v3063_v57  ;;  %v1071_v15 = vadd.f32 %v1070_v1, %v912_v30  ;;  %v3070_v8 = vadd.f32 1.0, %v2941_v2  ;;  %v791_v37 = vmul.f32 %v3821_v23, %v3786_v29  ;;  %v792_v39 = vmul.f32 %v3822_v56, %v3794_v55 }
 0x118   : >> { %v820_v26 = vsub.f32 %v3819_v3, %v788_v21  ;;  %1645 = vlog2.f32 %v3050_v46  ;;  %v3823_v44 = vmax.f32 %v3772_v5, 0.0  ;;  %v875_v9 = vmul.f32 0.6931472, %v1634_v35 }
 0x119   : >> { %3820 = vst [vmem:[#allocation71_spill] sm:$0xff] %v3070_v8  ;;  %v915_v3 = vadd.f32 %v871_v53, %v819_v41  ;;  %v1072_v33 = vadd.f32 %v1071_v15, %v913_v49  ;;  %v1638_v30 = vpop.eup %1637  ;;  %v3080_v43 = vadd.f32 1.0, %v2952_v63  ;;  %v3825_v21 = vmax.f32 %v3779_v14, 0.0  ;;  %v3826_v53 = vld [vmem:[#allocation47_spill] sm:$0xff] }
 0x11a   : >> { %v821_v62 = vsub.f32 %v3823_v44, %v789_v36  ;;  %1647 = vlog2.f32 %v3060_v4  ;;  %v1195_v1 = vadd.f32 %v1194_v59, %v3776_v54  ;;  %v877_v2 = vmul.f32 0.6931472, %v1636_v52  ;;  %v3827_v49 = vld [vmem:[#allocation83_spill] sm:$0xff]  ;;  %v3829_v59 = vld [vmem:[#allocation92_spill] sm:$0xff]  ;;  %v3832_v4 = vld [vmem:[#allocation94_spill] sm:$0xff] }
 0x11b   : >> { %3824 = vst [vmem:[#allocation72_spill] sm:$0xff] %v3080_v43  ;;  %v822_v20 = vsub.f32 %v3825_v21, %v790_v34  ;;  %1649 = vlog2.f32 %v3063_v57  ;;  %v916_v5 = vadd.f32 %v873_v32, %v820_v26  ;;  %v1073_v36 = vadd.f32 %v1072_v33, %v914_v12  ;;  %v1640_v35 = vpop.eup %1639  ;;  %v344_v34 = vld [vmem:[%s2421_s28 + $0xf0] sm:$0xff]  ;;  %v3830_v12 = vld [vmem:[#allocation16_spill] sm:$0xff] }
 0x11c   : >> { %v762_v41 = vmax.f32 %v3826_v53, 0.0  ;;  %v793_v15 = vmul.f32 %v3827_v49, %v3804_v18  ;;  %v3828_v44 = vmax.f32 %v3786_v29, 0.0  ;;  %1651 = vlog2.f32 %v3070_v8  ;;  %v3841_v29 = vld [vmem:[#allocation98_spill] sm:$0xff] }
 0x11d   : >> { %v879_v21 = vmul.f32 0.6931472, %v1638_v30  ;;  %v917_v14 = vadd.f32 %v875_v9, %v821_v62  ;;  %1653 = vrcp.f32 %v3829_v59  ;;  %v1074_v52 = vadd.f32 %v1073_v36, %v915_v3  ;;  %v1642_v32 = vpop.eup %1641  ;;  %v3835_v36 = vld [vmem:[#allocation48_spill] sm:$0xff] }
 0x11e   : >> { %v823_v63 = vsub.f32 %v3828_v44, %v791_v37  ;;  %v794_v26 = vmul.f32 %v3830_v12, %v3826_v53  ;;  %v3831_v33 = vmax.f32 %v3794_v55, 0.0  ;;  %1655 = vrcp.f32 %v3832_v4  ;;  %v3836_v53 = vld [vmem:[#allocation17_spill] sm:$0xff]  ;;  %v345_v4 = vld [vmem:[%s2421_s28 + $0xf8] sm:$0xff] }
 0x11f   : >> { %v1196_v37 = vadd.f32 %v1195_v1, %v3780_v45  ;;  %v881_v44 = vmul.f32 0.6931472, %v1640_v35  ;;  %1657 = vlog2.f32 %v3080_v43  ;;  %v918_v30 = vadd.f32 %v877_v2, %v822_v20  ;;  %v1644_v9 = vpop.eup %1643  ;;  %v3839_v20 = vld [vmem:[#allocation49_spill] sm:$0xff] }
 0x120   : >> { %v824_v57 = vsub.f32 %v3831_v33, %v792_v39  ;;  %v1075_v62 = vadd.f32 %v1074_v52, %v916_v5  ;;  %v3104_v3 = vsel %vm510_vm12, %v344_v34, 0.0  ;;  %v763_v8 = vmax.f32 %v3835_v36, 0.0  ;;  %v3837_v39 = vld [vmem:[#allocation96_spill] sm:$0xff]  ;;  %v3840_v34 = vld [vmem:[#allocation87_spill] sm:$0xff] }
 0x121   : >> { %3834 = vst [vmem:[#allocation81_spill] sm:$0xff] %v3104_v3  ;;  %v795_v55 = vmul.f32 %v3836_v53, %v3835_v36  ;;  %1659 = vrcp.f32 %v3837_v39  ;;  %v3838_v1 = vmax.f32 %v3804_v18, 0.0  ;;  %v883_v33 = vmul.f32 0.6931472, %v1642_v32 }
 0x122   : >> { %v919_v43 = vadd.f32 %v879_v21, %v823_v63  ;;  %v1076_v2 = vadd.f32 %v1075_v62, %v917_v14  ;;  %v1646_v5 = vpop.eup %1645  ;;  %v764_v52 = vmax.f32 %v3839_v20, 0.0  ;;  %v796_v59 = vmul.f32 %v3840_v34, %v3839_v20  ;;  %v3844_v63 = vld [vmem:[#allocation50_spill] sm:$0xff]  ;;  %v3846_v62 = vld [vmem:[#allocation100_spill] sm:$0xff] }
 0x123   : >> { %v825_v35 = vsub.f32 %v3838_v1, %v793_v15  ;;  %1661 = vrcp.f32 %v3841_v29  ;;  %v1197_v46 = vadd.f32 %v1196_v37, %v3783_v47  ;;  %v826_v36 = vsub.f32 %v762_v41, %v794_v26  ;;  %v3845_v21 = vld [vmem:[#allocation18_spill] sm:$0xff] }
 0x124   : >> { %v885_v40 = vmul.f32 0.6931472, %v1644_v9  ;;  %v920_v39 = vadd.f32 %v881_v44, %v824_v57  ;;  %v1077_v24 = vadd.f32 %v1076_v2, %v918_v30  ;;  %v1648_v45 = vpop.eup %1647  ;;  %v3120_v15 = vsel %vm511_vm15, %v345_v4, 0.0  ;;  %v3847_v57 = vld [vmem:[#allocation51_spill] sm:$0xff]  ;;  %v3848_v30 = vld [vmem:[#allocation102_spill] sm:$0xff] }
 0x125   : >> { %3843 = vst [vmem:[#allocation83_spill] sm:$0xff] %v3120_v15  ;;  %v765_v14 = vmax.f32 %v3844_v63, 0.0  ;;  %v797_v32 = vmul.f32 %v3845_v21, %v3844_v63  ;;  %1663 = vrcp.f32 %v3846_v62  ;;  %v1650_v1 = vpop.eup %1649  ;;  %v827_v29 = vsub.f32 %v763_v8, %v795_v55  ;;  %v3849_v55 = vld [vmem:[#allocation52_spill] sm:$0xff] }
 0x126   : >> { %v887_v20 = vmul.f32 0.6931472, %v1646_v5  ;;  %v921_v37 = vadd.f32 %v883_v33, %v825_v35  ;;  %v1078_v41 = vadd.f32 %v1077_v24, %v919_v43  ;;  %v1652_v26 = vpop.eup %1651  ;;  %v766_v44 = vmax.f32 %v3847_v57, 0.0  ;;  %v3850_v43 = vld [vmem:[#allocation104_spill] sm:$0xff] }
 0x127   : >> { %v798_v18 = vmul.f32 %v3104_v3, %v3847_v57  ;;  %1665 = vrcp.f32 %v3848_v30  ;;  %v1198_v9 = vadd.f32 %v1197_v46, %v3787_v25  ;;  %v1654_v4 = vpop.eup %1653  ;;  %v828_v2 = vsub.f32 %v764_v52, %v796_v59  ;;  %v3851_v52 = vld [vmem:[#allocation106_spill] sm:$0xff] }
 0x128   : >> { %v889_v63 = vmul.f32 0.6931472, %v1648_v45  ;;  %v922_v47 = vadd.f32 %v885_v40, %v826_v36  ;;  %v1079_v62 = vadd.f32 %v1078_v41, %v920_v39  ;;  %v1656_v21 = vpop.eup %1655  ;;  %v767_v8 = vmax.f32 %v3849_v55, 0.0  ;;  %v3852_v36 = vld [vmem:[#allocation73_spill] sm:$0xff]  ;;  %v3853_v39 = vld [vmem:[#allocation74_spill] sm:$0xff] }
 0x129   : >> { %v799_v24 = vmul.f32 %v3120_v15, %v3849_v55  ;;  %1667 = vrcp.f32 %v3850_v43  ;;  %v1658_v35 = vpop.eup %1657  ;;  %v829_v33 = vsub.f32 %v765_v14, %v797_v32  ;;  %v891_v5 = vmul.f32 0.6931472, %v1650_v1  ;;  %v3854_v14 = vld [vmem:[#allocation21_spill] sm:$0xff] }
 0x12a   : >> { %v923_v57 = vadd.f32 %v887_v20, %v827_v29  ;;  %v1080_v30 = vadd.f32 %v1079_v62, %v921_v37  ;;  %v830_v46 = vsub.f32 %v766_v44, %v798_v18  ;;  %v893_v25 = vmul.f32 0.6931472, %v1652_v26  ;;  %v3855_v20 = vld [vmem:[#allocation22_spill] sm:$0xff]  ;;  %v3856_v29 = vld [vmem:[#allocation75_spill] sm:$0xff] }
 0x12b   : >> { %v1660_v3 = vpop.eup %1659  ;;  %1669 = vrcp.f32 %v3851_v52  ;;  %v1199_v40 = vadd.f32 %v1198_v9, %v3790_v42  ;;  %v924_v45 = vadd.f32 %v889_v63, %v828_v2  ;;  %v992_v59 = vmul.f32 %v1654_v4, %v3852_v36  ;;  %v3857_v18 = vld [vmem:[#allocation111_spill] sm:$0xff]  ;;  %v3859_v2 = vld [vmem:[#allocation76_spill] sm:$0xff]  ;;  %v3862_v52 = vld [vmem:[#allocation25_spill] sm:$0xff] }
 0x12c   : >> { %v993_v41 = vmul.f32 %v1656_v21, %v3853_v39  ;;  %v1081_v55 = vadd.f32 %v1080_v30, %v922_v47  ;;  %v831_v43 = vsub.f32 %v767_v8, %v799_v24  ;;  %1671 = vrcp.f32 %v2870_v27  ;;  %v3858_v9 = vld [vmem:[#allocation23_spill] sm:$0xff] }
 0x12d   : >> { %v1662_v15 = vpop.eup %1661  ;;  %vm960_vm10 = vcmp.ge.f32.partialorder %v3854_v14, 0.0  ;;  %vm961_vm11 = vcmp.ge.f32.partialorder %v3855_v20, 0.0  ;;  %v895_v32 = vmul.f32 0.6931472, %v1658_v35  ;;  %v925_v1 = vadd.f32 %v891_v5, %v829_v33  ;;  %v3860_v35 = vld [vmem:[#allocation24_spill] sm:$0xff]  ;;  %v3868_v20 = vld [vmem:[#allocation79_spill] sm:$0xff] }
 0x12e   : >> { %v994_v37 = vmul.f32 %v1660_v3, %v3856_v29  ;;  %v1082_v26 = vadd.f32 %v1081_v55, %v923_v57  ;;  %v926_v63 = vadd.f32 %v893_v25, %v830_v46  ;;  %1673 = vrcp.f32 %v3857_v18  ;;  %v3861_v57 = vld [vmem:[#allocation77_spill] sm:$0xff] }
 0x12f   : >> { %v1664_v44 = vpop.eup %1663  ;;  %vm962_vm12 = vcmp.ge.f32.partialorder %v3858_v9, 0.0  ;;  %v1200_v47 = vadd.f32 %v1199_v40, %v3795_v48  ;;  %v995_v62 = vmul.f32 %v1662_v15, %v3859_v2  ;;  %v1024_v27 = vsel %vm960_vm10, %v1654_v4, %v992_v59  ;;  %v3863_v40 = vld [vmem:[#allocation53_spill] sm:$0xff]  ;;  %v3864_v4 = vld [vmem:[#allocation54_spill] sm:$0xff] }
 0x130   : >> { %v1025_v8 = vsel %vm961_vm11, %v1656_v21, %v993_v41  ;;  %v1083_v24 = vadd.f32 %v1082_v26, %v924_v45  ;;  %1675 = vrcp.f32 %v2897_v0  ;;  %vm963_vm13 = vcmp.ge.f32.partialorder %v3860_v35, 0.0  ;;  %v3865_v45 = vld [vmem:[#allocation78_spill] sm:$0xff] }
 0x131   : >> { %v1666_v30 = vpop.eup %1665  ;;  %v927_v33 = vadd.f32 %v895_v32, %v831_v43  ;;  %v996_v55 = vmul.f32 %v1664_v44, %v3861_v57  ;;  %v1026_v25 = vsel %vm962_vm12, %v1660_v3, %v994_v37  ;;  %1677 = vrcp.f32 %v2907_v6  ;;  %v3866_v3 = vld [vmem:[#allocation26_spill] sm:$0xff]  ;;  %v3867_v6 = vld [vmem:[#allocation55_spill] sm:$0xff] }
 0x132   : >> { %v1084_v5 = vadd.f32 %v1083_v24, %v925_v1  ;;  %vm964_vm14 = vcmp.ge.f32.partialorder %v3862_v52, 0.0  ;;  %v1088_v36 = vmul.f32 %v1024_v27, %v3863_v40  ;;  %v1089_v21 = vmul.f32 %v1025_v8, %v3864_v4  ;;  %v3875_v40 = vld [vmem:[#allocation30_spill] sm:$0xff] }
 0x133   : >> { %v1668_v46 = vpop.eup %1667  ;;  %v997_v59 = vmul.f32 %v1666_v30, %v3865_v45  ;;  %v1027_v39 = vsel %vm963_vm13, %v1662_v15, %v995_v62  ;;  %v1201_v41 = vadd.f32 %v1200_v47, %v3799_v51  ;;  %1679 = vrcp.f32 %v2914_v22  ;;  %v3869_v22 = vld [vmem:[#allocation80_spill] sm:$0xff]  ;;  %v3870_v47 = vld [vmem:[#allocation15_spill] sm:$0xff] }
 0x134   : >> { %v1085_v0 = vadd.f32 %v1084_v5, %v926_v63  ;;  %vm965_vm15 = vcmp.ge.f32.partialorder %v3866_v3, 0.0  ;;  %v1090_v14 = vmul.f32 %v1026_v25, %v3867_v6  ;;  %v998_v32 = vmul.f32 %v1668_v46, %v3868_v20 }
 0x135   : >> { %v1670_v43 = vpop.eup %1669  ;;  %v1028_v1 = vsel %vm964_vm14, %v1664_v44, %v996_v55  ;;  %1681 = vrcp.f32 %v2920_v38  ;;  %v1091_v15 = vmul.f32 %v1027_v39, %v2592_v17  ;;  %v1120_v26 = vadd.f32 %v1089_v21, %v1088_v36  ;;  %v3872_v38 = vld [vmem:[#allocation29_spill] sm:$0xff]  ;;  %v3873_v17 = vld [vmem:[#allocation82_spill] sm:$0xff]  ;;  %v3874_v55 = vld [vmem:[#allocation56_spill] sm:$0xff] }
 0x136   : >> { %v1086_v29 = vadd.f32 %v1085_v0, %v927_v33  ;;  %v1672_v37 = vpop.eup %1671  ;;  %v1152_v63 = vadd.f32 %v1025_v8, %v1024_v27  ;;  %v999_v18 = vmul.f32 %v1670_v43, %v3869_v22  ;;  %v1029_v9 = vsel %vm965_vm15, %v1666_v30, %v997_v59  ;;  %v3878_v21 = vld [vmem:[#allocation57_spill] sm:$0xff]  ;;  %v3879_v0 = vld [vmem:[#allocation31_spill] sm:$0xff] }
 0x137   : >> { %v1202_v2 = vadd.f32 %v1201_v41, %v3805_v11  ;;  %1683 = vrcp.f32 %v2925_v31  ;;  %v1092_v44 = vmul.f32 %v1028_v1, %v2596_v28  ;;  %v1121_v35 = vadd.f32 %v1120_v26, %v1090_v14  ;;  %v3876_v28 = vld [vmem:[#allocation84_spill] sm:$0xff]  ;;  %v3880_v41 = vld [vmem:[#allocation85_spill] sm:$0xff] }
 0x138   : >> { %v3166_v4 = vadd.f32 %v3870_v47, %v1086_v29   ;;  %v1674_v24 = vpop.eup %1673  ;;  %v1153_v33 = vadd.f32 %v1152_v63, %v1026_v25  ;;  %vm968_vm2 = vcmp.ge.f32.partialorder %v3872_v38, 0.0  ;;  %v1000_v57 = vmul.f32 %v1672_v37, %v3873_v17  ;;  %v3882_v29 = vld [vmem:[#allocation32_spill] sm:$0xff] }
 0x139   : >> { %v1030_v27 = vsel %vm966_vm0, %v1668_v46, %v998_v32  ;;  %v1203_v8 = vadd.f32 %v1202_v2, %v3809_v7  ;;  %1685 = vrcp.f32 %v2936_v10  ;;  %v1093_v5 = vmul.f32 %v1029_v9, %v3874_v55  ;;  %v3877_v46 = vld [vmem:[#allocation116_spill] sm:$0xff] }
 0x13a   : >> { %v3871_v62 = vmov %v3166_v4  ;;  %v1676_v30 = vpop.eup %1675  ;;  %v1122_v52 = vadd.f32 %v1121_v35, %v1091_v15  ;;  %v1154_v31 = vadd.f32 %v1153_v33, %v1027_v39  ;;  %vm969_vm3 = vcmp.ge.f32.partialorder %v3875_v40, 0.0  ;;  %v3883_v15 = vld [vmem:[#allocation86_spill] sm:$0xff]  ;;  %v3887_v35 = vld [vmem:[#allocation88_spill] sm:$0xff] }
 0x13b   : >> { %v1001_v25 = vmul.f32 %v1674_v24, %v3876_v28  ;;  %v1031_v36 = vsel %vm967_vm1, %v1670_v43, %v999_v18  ;;  %v1204_v4 = vadd.f32 %v1203_v8, %v3813_v50  ;;  %v1678_v58 = vpop.eup %1677  ;;  %1687 = vrcp.f32 %v3877_v46  ;;  %v3881_v43 = vld [vmem:[#allocation58_spill] sm:$0xff]  ;;  %v3885_v18 = vld [vmem:[#allocation59_spill] sm:$0xff] }
 0x13c   : >> { %v1094_v45 = vmul.f32 %v1030_v27, %v3878_v21  ;;  %v1123_v59 = vadd.f32 %v1122_v52, %v1092_v44  ;;  %v1155_v10 = vadd.f32 %v1154_v31, %v1028_v1  ;;  %vm970_vm4 = vcmp.ge.f32.partialorder %v3879_v0, 0.0  ;;  %v3886_v44 = vld [vmem:[#allocation33_spill] sm:$0xff]  ;;  %v3890_v52 = vld [vmem:[#allocation34_spill] sm:$0xff] }
 0x13d   : >> { %v1002_v39 = vmul.f32 %v1676_v30, %v3880_v41  ;;  %v1032_v3 = vsel %vm968_vm2, %v1672_v37, %v1000_v57  ;;  %v1205_v6 = vadd.f32 %v1204_v4, %v3814_v60  ;;  %v1680_v19 = vpop.eup %1679  ;;  %1689 = vrcp.f32 %v2958_v13  ;;  %v3884_v37 = vld [vmem:[#allocation62_spill] sm:$0xff]  ;;  %v3889_v57 = vld [vmem:[#allocation60_spill] sm:$0xff]  ;;  %v3891_v31 = vld [vmem:[#allocation89_spill] sm:$0xff] }
 0x13e   : >> { %v1095_v14 = vmul.f32 %v1031_v36, %v3881_v43  ;;  %v1124_v20 = vadd.f32 %v1123_v59, %v1093_v5  ;;  %v1156_v32 = vadd.f32 %v1155_v10, %v1029_v9  ;;  %vm971_vm5 = vcmp.ge.f32.partialorder %v3882_v29, 0.0  ;;  %v3894_v59 = vld [vmem:[#allocation90_spill] sm:$0xff] }
 0x13f   : >> { %v1003_v1 = vmul.f32 %v1678_v58, %v3883_v15  ;;  %v1033_v26 = vsel %vm969_vm3, %v1674_v24, %v1001_v25  ;;  %v1206_v63 = vadd.f32 %v1205_v6, %v3821_v23  ;;  %v1682_v22 = vpop.eup %1681  ;;  %1691 = vrcp.f32 %v3884_v37  ;;  %v3888_v24 = vld [vmem:[#allocation63_spill] sm:$0xff]  ;;  %v3899_v37 = vld [vmem:[#allocation37_spill] sm:$0xff] }
 0x140   : >> { %v1096_v47 = vmul.f32 %v1032_v3, %v3885_v18  ;;  %v1125_v2 = vadd.f32 %v1124_v20, %v1094_v45  ;;  %v1157_v13 = vadd.f32 %v1156_v32, %v1030_v27  ;;  %vm972_vm6 = vcmp.ge.f32.partialorder %v3886_v44, 0.0  ;;  %v3893_v45 = vld [vmem:[#allocation35_spill] sm:$0xff] }
 0x141   : >> { %v1004_v9 = vmul.f32 %v1680_v19, %v3887_v35  ;;  %v1034_v33 = vsel %vm970_vm4, %v1676_v30, %v1002_v39  ;;  %v1207_v38 = vadd.f32 %v1206_v63, %v3822_v56  ;;  %v1684_v17 = vpop.eup %1683  ;;  %1693 = vrcp.f32 %v3888_v24  ;;  %v3892_v30 = vld [vmem:[#allocation118_spill] sm:$0xff] }
 0x142   : >> { %v1097_v8 = vmul.f32 %v1033_v26, %v3889_v57  ;;  %v1126_v55 = vadd.f32 %v1125_v2, %v1095_v14  ;;  %v1158_v5 = vadd.f32 %v1157_v13, %v1031_v36  ;;  %vm973_vm7 = vcmp.ge.f32.partialorder %v3890_v52, 0.0  ;;  %v3896_v14 = vld [vmem:[#allocation36_spill] sm:$0xff]  ;;  %v3905_v57 = vld [vmem:[#allocation18_spill] sm:$0xff] }
 0x143   : >> { %v1005_v27 = vmul.f32 %v1682_v22, %v3891_v31  ;;  %v1035_v40 = vsel %vm971_vm5, %v1678_v58, %v1003_v1  ;;  %v1208_v28 = vadd.f32 %v1207_v38, %v3827_v49  ;;  %v1686_v25 = vpop.eup %1685  ;;  %1695 = vrcp.f32 %v3892_v30  ;;  %v3895_v58 = vld [vmem:[#allocation119_spill] sm:$0xff]  ;;  %v3902_v13 = vld [vmem:[#allocation64_spill] sm:$0xff]  ;;  %v3903_v38 = vld [vmem:[#allocation38_spill] sm:$0xff] }
 0x144   : >> { %v1098_v4 = vmul.f32 %v1034_v33, %v3810_v61  ;;  %v1127_v46 = vadd.f32 %v1126_v55, %v1096_v47  ;;  %v1159_v21 = vadd.f32 %v1158_v5, %v1032_v3  ;;  %vm974_vm8 = vcmp.ge.f32.partialorder %v3893_v45, 0.0  ;;  %v3897_v61 = vld [vmem:[#allocation91_spill] sm:$0xff]  ;;  %v3907_v5 = vld [vmem:[#allocation65_spill] sm:$0xff] }
 0x145   : >> { %v1006_v36 = vmul.f32 %v1684_v17, %v3894_v59  ;;  %v1036_v10 = vsel %vm972_vm6, %v1680_v19, %v1004_v9  ;;  %v1209_v0 = vadd.f32 %v1208_v28, %v3830_v12  ;;  %v1688_v41 = vpop.eup %1687  ;;  %1697 = vrcp.f32 %v3895_v58  ;;  %v3898_v19 = vld [vmem:[#allocation120_spill] sm:$0xff]  ;;  %v3908_v28 = vld [vmem:[#allocation39_spill] sm:$0xff]  ;;  %v3909_v30 = vld [vmem:[#allocation97_spill] sm:$0xff] }
 0x146   : >> { %v1099_v39 = vmul.f32 %v1035_v40, %v3773_v16  ;;  %v1128_v6 = vadd.f32 %v1127_v46, %v1097_v8  ;;  %v1160_v43 = vadd.f32 %v1159_v21, %v1033_v26  ;;  %vm975_vm9 = vcmp.ge.f32.partialorder %v3896_v14, 0.0  ;;  %v3900_v16 = vld [vmem:[#allocation93_spill] sm:$0xff]  ;;  %v3912_v59 = vld [vmem:[#allocation66_spill] sm:$0xff]  ;;  %v3915_v14 = vld [vmem:[#allocation83_spill] sm:$0xff] }
 0x147   : >> { %v1007_v3 = vmul.f32 %v1686_v25, %v3897_v61  ;;  %v1037_v20 = vsel %vm973_vm7, %v1682_v22, %v1005_v27  ;;  %v1210_v32 = vadd.f32 %v1209_v0, %v3836_v53  ;;  %v1690_v29 = vpop.eup %1689  ;;  %1699 = vrcp.f32 %v3898_v19  ;;  %v3901_v22 = vld [vmem:[#allocation67_spill] sm:$0xff]  ;;  %v3910_v46 = vld [vmem:[#allocation81_spill] sm:$0xff] }
 0x148   : >> { %v1100_v15 = vmul.f32 %v1036_v10, %v3776_v54  ;;  %v1129_v1 = vadd.f32 %v1128_v6, %v1098_v4  ;;  %v1161_v63 = vadd.f32 %v1160_v43, %v1034_v33  ;;  %vm976_vm10 = vcmp.ge.f32.partialorder %v3899_v37, 0.0  ;;  %v3904_v54 = vld [vmem:[#allocation95_spill] sm:$0xff] }
 0x149   : >> { %v1008_v26 = vmul.f32 %v1688_v41, %v3900_v16  ;;  %v1038_v18 = vsel %vm974_vm8, %v1684_v17, %v1006_v36  ;;  %v1211_v47 = vadd.f32 %v1210_v32, %v3840_v34  ;;  %v1692_v2 = vpop.eup %1691  ;;  %1701 = vrcp.f32 %v3901_v22  ;;  %v3906_v17 = vld [vmem:[#allocation68_spill] sm:$0xff]  ;;  %v3914_v6 = vld [vmem:[#allocation99_spill] sm:$0xff] }
 0x14a   : >> { %v1101_v44 = vmul.f32 %v1037_v20, %v3902_v13  ;;  %v1130_v35 = vadd.f32 %v1129_v1, %v1099_v39  ;;  %v1162_v9 = vadd.f32 %v1161_v63, %v1035_v40  ;;  %vm977_vm11 = vcmp.ge.f32.partialorder %v3903_v38, 0.0  ;;  %v3913_v39 = vld [vmem:[#allocation40_spill] sm:$0xff]  ;;  %v3917_v1 = vld [vmem:[#allocation41_spill] sm:$0xff] }
 0x14b   : >> { %v1009_v33 = vmul.f32 %v1690_v29, %v3904_v54  ;;  %v1039_v24 = vsel %vm975_vm9, %v1686_v25, %v1007_v3  ;;  %v1212_v8 = vadd.f32 %v1211_v47, %v3905_v57  ;;  %v1694_v55 = vpop.eup %1693  ;;  %1703 = vrcp.f32 %v3906_v17  ;;  %v3911_v25 = vld [vmem:[#allocation27_spill] sm:$0xff]  ;;  %v3918_v63 = vld [vmem:[#allocation101_spill] sm:$0xff]  ;;  %v3919_v16 = vld [vmem:[#allocation12_spill] sm:$0xff] }
 0x14c   : >> { %v1102_v52 = vmul.f32 %v1038_v18, %v3907_v5  ;;  %v1131_v31 = vadd.f32 %v1130_v35, %v1100_v15  ;;  %v1163_v27 = vadd.f32 %v1162_v9, %v1036_v10  ;;  %vm978_vm12 = vcmp.ge.f32.partialorder %v3908_v28, 0.0  ;;  %v3920_v47 = vld [vmem:[#allocation28_spill] sm:$0xff]  ;;  %v3923_v54 = vld [vmem:[#allocation61_spill] sm:$0xff]  ;;  %v3924_v17 = vld [vmem:[#allocation43_spill] sm:$0xff] }
 0x14d   : >> { %v1010_v40 = vmul.f32 %v1692_v2, %v3909_v30  ;;  %v1040_v4 = vsel %vm976_vm10, %v1688_v41, %v1008_v26  ;;  %v1213_v21 = vadd.f32 %v1212_v8, %v3910_v46  ;;  %v1696_v45 = vpop.eup %1695  ;;  %1705 = vrcp.f32 %v3911_v25  ;;  %v3916_v41 = vld [vmem:[#allocation69_spill] sm:$0xff]  ;;  %v3927_v30 = vld [vmem:[#allocation44_spill] sm:$0xff]  ;;  %v3929_v25 = vld [vmem:[#allocation71_spill] sm:$0xff] }
 0x14e   : >> { %v1103_v36 = vmul.f32 %v1039_v24, %v3912_v59  ;;  %v1132_v0 = vadd.f32 %v1131_v31, %v1101_v44  ;;  %v1164_v58 = vadd.f32 %v1163_v27, %v1037_v20  ;;  %vm979_vm13 = vcmp.ge.f32.partialorder %v3913_v39, 0.0  ;;  %v3925_v5 = vld [vmem:[#allocation105_spill] sm:$0xff]  ;;  %v3926_v31 = vld [vmem:[#allocation70_spill] sm:$0xff] }
 0x14f   : >> { %v1011_v10 = vmul.f32 %v1694_v55, %v3914_v6  ;;  %v1041_v43 = vsel %vm977_vm11, %v1690_v29, %v1009_v33  ;;  %v1214_v61 = vadd.f32 %v1213_v21, %v3915_v14  ;;  %v1698_v3 = vpop.eup %1697  ;;  %1707 = vrcp.f32 %v3916_v41  ;;  %v3933_v41 = vld [vmem:[#allocation109_spill] sm:$0xff] }
 0x150   : >> { %v1104_v32 = vmul.f32 %v1040_v4, %v3790_v42  ;;  %v1133_v19 = vadd.f32 %v1132_v0, %v1102_v52  ;;  %v1165_v15 = vadd.f32 %v1164_v58, %v1038_v18  ;;  %vm980_vm14 = vcmp.ge.f32.partialorder %v3917_v1, 0.0  ;;  %v3921_v42 = vld [vmem:[#allocation42_spill] sm:$0xff]  ;;  %v3922_v18 = vld [vmem:[#allocation103_spill] sm:$0xff]  ;;  %v3930_v0 = vld [vmem:[#allocation45_spill] sm:$0xff] }
 0x151   : >> { %v1012_v20 = vmul.f32 %v1696_v45, %v3918_v63  ;;  %v1042_v37 = vsel %vm978_vm12, %v1692_v2, %v1010_v40  ;;  %v3260_v26 = vadd.f32 %v3919_v16, %v1214_v61   ;;  %v1700_v29 = vpop.eup %1699  ;;  %1709 = vrcp.f32 %v3920_v47  ;;  %v3928_v40 = vld [vmem:[#allocation107_spill] sm:$0xff]  ;;  %v3931_v58 = vld [vmem:[#allocation108_spill] sm:$0xff] }
 0x152   : >> { %v1105_v22 = vmul.f32 %v1041_v43, %v3795_v48  ;;  %v1134_v13 = vadd.f32 %v1133_v19, %v1103_v36  ;;  %v1166_v44 = vadd.f32 %v1165_v15, %v1039_v24  ;;  %vm981_vm15 = vcmp.ge.f32.partialorder %v3921_v42, 0.0  ;;  %v3934_v15 = vld [vmem:[#allocation46_spill] sm:$0xff]  ;;  %v3936_v47 = vld [vmem:[#allocation47_spill] sm:$0xff]  ;;  %v3937_v42 = vld [vmem:[#allocation112_spill] sm:$0xff] }
 0x153   : >> { %v1013_v35 = vmul.f32 %v1698_v3, %v3922_v18  ;;  %v1043_v9 = vsel %vm979_vm13, %v1694_v55, %v1011_v10  ;;  %v1702_v38 = vpop.eup %1701  ;;  %1711 = vrcp.f32 %v3923_v54  ;;  %v1106_v2 = vmul.f32 %v1042_v37, %v3799_v51  ;;  %v3932_v10 = vld [vmem:[#allocation72_spill] sm:$0xff] }
 0x154   : >> { %v1135_v33 = vadd.f32 %v1134_v13, %v1104_v32  ;;  %v1167_v8 = vadd.f32 %v1166_v44, %v1040_v4  ;;  %vm982_vm0 = vcmp.ge.f32.partialorder %v3924_v17, 0.0  ;;  %v1014_v48 = vmul.f32 %v1700_v29, %v3925_v5 }
 0x155   : >> { %v1044_v24 = vsel %vm980_vm14, %v1696_v45, %v1012_v20  ;;  %v1704_v52 = vpop.eup %1703  ;;  %1713 = vrcp.f32 %v3926_v31  ;;  %v1107_v27 = vmul.f32 %v1043_v9, %v3805_v11  ;;  %vm983_vm1 = vcmp.ge.f32.partialorder %v3927_v30, 0.0  ;;  %v3941_v31 = vld [vmem:[#allocation114_spill] sm:$0xff] }
 0x156   : >> { %v1136_v55 = vadd.f32 %v1135_v33, %v1105_v22  ;;  %v1168_v28 = vadd.f32 %v1167_v8, %v1041_v43  ;;  %v1015_v51 = vmul.f32 %v1702_v38, %v3928_v40  ;;  %v1045_v4 = vsel %vm981_vm15, %v1698_v3, %v1013_v35  ;;  %v3939_v33 = vld [vmem:[#allocation113_spill] sm:$0xff]  ;;  %v3942_v30 = vld [vmem:[#allocation50_spill] sm:$0xff] }
 0x157   : >> { %v1706_v21 = vpop.eup %1705  ;;  %1715 = vrcp.f32 %v3929_v25  ;;  %v1108_v59 = vmul.f32 %v1044_v24, %v3809_v7  ;;  %vm984_vm2 = vcmp.ge.f32.partialorder %v3930_v0, 0.0  ;;  %v1016_v11 = vmul.f32 %v1704_v52, %v3931_v58  ;;  %v3945_v0 = vld [vmem:[#allocation117_spill] sm:$0xff] }
 0x158   : >> { %v1137_v45 = vadd.f32 %v1136_v55, %v1106_v2  ;;  %v1169_v36 = vadd.f32 %v1168_v28, %v1042_v37  ;;  %v1046_v39 = vsel %vm982_vm0, %v1700_v29, %v1014_v48  ;;  %1717 = vrcp.f32 %v3932_v10  ;;  %v3935_v37 = vld [vmem:[#allocation110_spill] sm:$0xff]  ;;  %v3940_v48 = vld [vmem:[#allocation49_spill] sm:$0xff] }
 0x159   : >> { %v1708_v6 = vpop.eup %1707  ;;  %v1109_v43 = vmul.f32 %v1045_v4, %v3813_v50  ;;  %v1017_v32 = vmul.f32 %v1706_v21, %v3933_v41  ;;  %v1047_v7 = vsel %vm983_vm1, %v1702_v38, %v1015_v51  ;;  %vm985_vm3 = vcmp.ge.f32.partialorder %v3934_v15, 0.0  ;;  %v3938_v38 = vld [vmem:[#allocation48_spill] sm:$0xff] }
 0x15a   : >> { %v1138_v61 = vadd.f32 %v1137_v45, %v1107_v27  ;;  %v1170_v3 = vadd.f32 %v1169_v36, %v1043_v9  ;;  %v1110_v1 = vmul.f32 %v1046_v39, %v3814_v60  ;;  %v1018_v16 = vmul.f32 %v1708_v6, %v3935_v37 }
 0x15b   : >> { %v1710_v19 = vpop.eup %1709  ;;  %v1048_v29 = vsel %vm984_vm2, %v1704_v52, %v1016_v11  ;;  %vm986_vm4 = vcmp.ge.f32.partialorder %v3936_v47, 0.0  ;;  %v1111_v22 = vmul.f32 %v1047_v7, %v3821_v23  ;;  %v1049_v35 = vsel %vm985_vm3, %v1706_v21, %v1017_v32  ;;  %v3948_v47 = vld [vmem:[#allocation13_spill] sm:$0xff] }
 0x15c   : >> { %v1139_v63 = vadd.f32 %v1138_v61, %v1108_v59  ;;  %v1171_v20 = vadd.f32 %v1170_v3, %v1044_v24  ;;  %v1019_v18 = vmul.f32 %v1710_v19, %v3937_v42  ;;  %vm987_vm5 = vcmp.ge.f32.partialorder %v3938_v38, 0.0  ;;  %v3944_v59 = vld [vmem:[#allocation51_spill] sm:$0xff] }
 0x15d   : >> { %v1712_v50 = vpop.eup %1711  ;;  %v1112_v60 = vmul.f32 %v1048_v29, %v3822_v56  ;;  %v1050_v17 = vsel %vm986_vm4, %v1708_v6, %v1018_v16  ;;  %vm988_vm6 = vcmp.ge.f32.partialorder %v3940_v48, 0.0  ;;  %v1113_v23 = vmul.f32 %v1049_v35, %v3827_v49 }
 0x15e   : >> { %v1140_v13 = vadd.f32 %v1139_v63, %v1109_v43  ;;  %v1172_v44 = vadd.f32 %v1171_v20, %v1045_v4  ;;  %v1020_v8 = vmul.f32 %v1712_v50, %v3939_v33  ;;  %v1051_v55 = vsel %vm987_vm5, %v1710_v19, %v1019_v18  ;;  %v3943_v4 = vld [vmem:[#allocation115_spill] sm:$0xff] }
 0x15f   : >> { %v1714_v9 = vpop.eup %1713  ;;  %vm989_vm7 = vcmp.ge.f32.partialorder %v3942_v30, 0.0  ;;  %v1114_v56 = vmul.f32 %v1050_v17, %v3830_v12  ;;  %vm990_vm8 = vcmp.ge.f32.partialorder %v3944_v59, 0.0  ;;  %v1115_v45 = vmul.f32 %v1051_v55, %v3836_v53  ;;  %v1225_v18 = vld [vmem:[%s2150_s21 + $0x18] sm:$0xff] (%p271_p8) }
 0x160   : >> { %v1141_v54 = vadd.f32 %v1140_v13, %v1110_v1  ;;  %v1173_v2 = vadd.f32 %v1172_v44, %v1046_v39  ;;  %v1021_v27 = vmul.f32 %v1714_v9, %v3941_v31  ;;  %v1052_v25 = vsel %vm988_vm6, %v1712_v50, %v1020_v8  ;;  %v3946_v39 = vld [vmem:[#allocation52_spill] sm:$0xff] }
 0x161   : >> { %v1716_v5 = vpop.eup %1715  ;;  %vm991_vm9 = vcmp.ge.f32.partialorder %v3946_v39, 0.0  ;;  %v1116_v6 = vmul.f32 %v1052_v25, %v3840_v34 }
 0x162   : >> { %v1142_v24 = vadd.f32 %v1141_v54, %v1111_v22  ;;  %v1174_v52 = vadd.f32 %v1173_v2, %v1047_v7  ;;  %v1718_v28 = vpop.eup %1717  ;;  %v1022_v21 = vmul.f32 %v1716_v5, %v3943_v4  ;;  %v1053_v11 = vsel %vm989_vm7, %v1714_v9, %v1021_v27 }
 0x163   : >> { %v1023_v58 = vmul.f32 %v1718_v28, %v3945_v0  ;;  %v1117_v61 = vmul.f32 %v1053_v11, %v3905_v57  ;;  %v3952_v4 = vmov %v3871_v62  ;;  %v1216_v57 = vld [vmem:[%s2150_s21] sm:$0xff] (%p271_p8) }
 0x164   : >> { %v1143_v40 = vadd.f32 %v1142_v24, %v1112_v60  ;;  %v1175_v51 = vadd.f32 %v1174_v52, %v1048_v29  ;;  %v1054_v43 = vsel %vm990_vm8, %v1716_v5, %v1022_v21  ;;  %v3947_v29 = vld [vmem:[#allocation14_spill] sm:$0xff]  ;;  %v1217_v13 = vadd.f32 (%p271_p8), %v1216_v57, %v3871_v62 }
 0x165   : >> { %v1055_v32 = vsel %vm991_vm9, %v1718_v28, %v1023_v58  ;;  %v1118_v7 = vmul.f32 %v1054_v43, %v3910_v46  ;;  %v1219_v46 = vld [vmem:[%s2150_s21 + $0x8] sm:$0xff] (%p271_p8) }
 0x166   : >> { %v1144_v49 = vadd.f32 %v1143_v40, %v1113_v23  ;;  %v1176_v36 = vadd.f32 %v1175_v51, %v1049_v35  ;;  %v1119_v15 = vmul.f32 %v1055_v32, %v3915_v14  ;;  %v1222_v14 = vld [vmem:[%s2150_s21 + $0x10] sm:$0xff] (%p271_p8)  ;;  %v1226_v35 = vadd.f32 (%p271_p8), %v1225_v18, %v3260_v26  ;;  %1218 = vst [vmem:[%s2150_s21] sm:$0xff] (%p271_p8), %v1217_v13 }
 0x168   : >> { %v1145_v10 = vadd.f32 %v1144_v49, %v1114_v56  ;;  %v1177_v12 = vadd.f32 %v1176_v36, %v1050_v17  ;;  %1227 = vst [vmem:[%s2150_s21 + $0x18] sm:$0xff] (%p271_p8), %v1226_v35 }
 0x16a   : >> { %v1146_v3 = vadd.f32 %v1145_v10, %v1115_v45  ;;  %v1178_v41 = vadd.f32 %v1177_v12, %v1051_v55 }
 0x16c   : >> { %v1147_v53 = vadd.f32 %v1146_v3, %v1116_v6  ;;  %v1179_v19 = vadd.f32 %v1178_v41, %v1052_v25 }
 0x16e   : >> { %v1148_v1 = vadd.f32 %v1147_v53, %v1117_v61  ;;  %v1180_v63 = vadd.f32 %v1179_v19, %v1053_v11 }
 0x170   : >> { %v1149_v20 = vadd.f32 %v1148_v1, %v1118_v7  ;;  %v1181_v37 = vadd.f32 %v1180_v63, %v1054_v43  ;;  %v3949_v1 = vmov %v3260_v26  ;;  %273 = sbr.rel (!%p271_p8) target bundleno = 126 (0x7e), region = 99 }
 0x172   : >> { %v1150_v16 = vadd.f32 %v1149_v20, %v1119_v15  ;;  %v1182_v34 = vadd.f32 %v1181_v37, %v1055_v32 }
 0x174   : >> { %v1151_v50 = vadd.f32 %v3947_v29, %v1150_v16   ;;  %v1183_v22 = vadd.f32 %v3948_v47, %v1182_v34  }
 0x176   : >> { %v3950_v2 = vmov %v1183_v22  ;;  %v3951_v3 = vmov %v1151_v50  ;;  %v1220_v44 = vadd.f32 (%p271_p8), %v1219_v46, %v1151_v50  ;;  %v1223_v42 = vadd.f32 (%p271_p8), %v1222_v14, %v1183_v22 }
 0x178   : > { %1221 = vst [vmem:[%s2150_s21 + $0x8] sm:$0xff] %v1220_v44  ;;  %1224 = vst [vmem:[%s2150_s21 + $0x10] sm:$0xff] %v1223_v42 }
 0x179   : > { %1788 = shalt.err (!%p1785_p3)
}
 0x17a   : > { %s1789_s5 = scalar_lea.hbm %s3339_s18, 512  ;;  %s1793_s27 = scalar_lea.hbm %s3411_s2, 1024 }
 0x17b   : > { %p1790_p10 = scmp.ne.s32.totalorder %s3339_s18, %s1789_s5  ;;  %p1794_p4 = scmp.lt.u32.totalorder %s3339_s18, %s3411_s2 }
 0x17c   : > { %p1795_p7 = scmp.lt.u32.totalorder %s1793_s27, %s1789_s5  ;;  %p1797_p6 = scmp.lt.u32.totalorder %s1789_s5, %s3339_s18 }
 0x17d   : > { %p1791_p0 = pnand %p1790_p10, %p3953_p9 }
 0x17e   : > { %p1796_p8 = por %p1795_p7, %p1794_p4 }
 0x17f   : > { %p1792_p5 = pneg %p1791_p0 }
 0x180   : > { %p1798_p11 = por %p1797_p6, %p1796_p8 }
 0x182   : > { %p1799_p12 = pnand %p1798_p11, %p1792_p5 }
 0x184   : > { %1802 = shalt.err (!%p1799_p12)
}
 0x185   : > { %s1935_s19 = smov 128   ;;  %s1936_s28 = smov 8  }
 0x186   : > { %1401 = dma.vmem_to_hbm [thread:$0]  (%p3953_p9), %s3345_s22, 512, %s3339_s18, %s3353_s15, %s1935_s19, %s1935_s19, %s1936_s28  }
 0x187 PF: > { %s1257_s7 = sand.u32 1, %s1873_s9   ;;  %p3954_p13 = scmp.ne.s32.totalorder %s3591_s4, 0 }
 0x188   : > { %p3955_p1 = scmp.ge.s32.totalorder %s1905_s17, 2  ;;  %s1258_s8 = scalar_lea.sflag [#allocation4], %s1257_s7 }
 0x18a   : > { %p1404_p2 = pnand %p3955_p1, %p3954_p13 }
 0x18c   : > { %1868 = dma.done.wait (!%p1404_p2), %s1258_s8, 512  }
 0x18d   : > { %1870 = vsyncadd (!%p1404_p2), %s1258_s8, 4294966784  ;;  %s21_s17 = sadd.s32 1, %s1905_s17   ;;  %s3956_s3 = sld [smem:[#allocation11_spill]] }
 0x18e   : > { %p18_p3 = scmp.ge.s32.totalorder %s21_s17, 4   ;;  %s3957_s9 = smov %s1877_s10 }
 0x18f   : > { %s3958_s10 = smov %s1881_s11  ;;  %s3959_s11 = smov %s2024_s29 }
 0x190   : > { %s3960_s12 = smov %s1889_s13  ;;  %s3961_s13 = smov %s1893_s14 }
 0x191   : > { %s3962_s14 = smov %s2027_s30  ;;  %s3963_s15 = smov %s1901_s16 }
 0x192   :  { %20 = sbr.rel (!%p18_p3) target bundleno = 10 (0xa), region = 110 }
 0x193   : > { %s3964_s16 = smov %s3956_s3 }
 0x199   :  { %1263 = vsyncpa [#allocation3], 1 }
 0x19a   :  { %1265 = vsyncpa [#allocation3 + $0x1], 1 }
 0x19b   :  { %1266 = vsyncpa [#allocation6], 1 }
 0x19c   :  { %1268 = vsyncpa [#allocation6 + $0x1], 1 }
 0x19d   :  { %1269 = vsyncpa [#allocation4], 1 }
 0x19e   :  { %1271 = vsyncpa [#allocation4 + $0x1], 1 }

</bundles_post_ra>
